<compile_context>
chip_gen: v7x
topology: tpu7x:2x2x1
jax: 0.10.0
libtpu: 0.0.40
codegen_flags: <defaults>
</compile_context>

<pallas_src>
import jax
import jax.numpy as jnp
from jax.experimental import pallas as pl
from jax.experimental.pallas import tpu as pltpu

# ----- small deterministic config (mirrors module __init__ shapes) -----
N_NUM = 4                        # numeric features per timestep
EMB_SPECS = [(10, 8), (5, 8)]    # (num_embeddings, embedding_dim) per categorical col
HIDDEN = 32                      # LSTM hidden size (bidirectional -> 2*HIDDEN features)
FC_HIDDEN = 512
OUTPUT_DIM = 8                   # config.output_dim
RC_DIM = 9
B, T = 2, 8
D_IN = N_NUM + sum(e for _, e in EMB_SPECS)   # 4 + 16 = 20

# TODO(synk): LinBnReLu's definition is not provided by the spec.  Assumed here:
# first block = Linear -> ReLU (dropout is an inference no-op), final block = plain
# Linear (logits for a multi-label BCE-style loss).  Flip FINAL_RELU to True if the
# reference LinBnReLu always applies ReLU, including on the last layer.
FINAL_RELU = False


def lstm_mlc_kernel(x_ref, wih_ref, b_ref, whh_f_ref, whh_b_ref,
                    w1p_ref, b1p_ref, w2p_ref, b2p_ref,
                    w1r_ref, b1r_ref, w2r_ref, b2r_ref,
                    press_ref, rc_ref,
                    xpf_ref, xpb_ref, h_slab):
    TB = x_ref.shape[0]
    H = whh_f_ref.shape[0]
    B_ = rc_ref.shape[0]
    T_ = TB // B_

    # ---- hoisted input projection: ONE (T*B, D) x (D, 8H) bf16 matmul ----
    xproj = (jnp.dot(x_ref[...].astype(jnp.bfloat16), wih_ref[...],
                     preferred_element_type=jnp.float32)
             + b_ref[...])                                    # (T*B, 8H) f32
    xpf_ref[...] = xproj[:, :4 * H]                           # vreg-aligned 128-lane halves
    xpb_ref[...] = xproj[:, 4 * H:]

    whh_f = whh_f_ref[...]                                    # (H, 4H) bf16
    whh_b = whh_b_ref[...]

    def cell(xg, h, c, whh):
        # PyTorch gate order i, f, g, o.  One full-vreg sigmoid + narrow tanh slices.
        gates = xg + jnp.dot(h.astype(jnp.bfloat16), whh,
                             preferred_element_type=jnp.float32)   # (B, 4H) f32
        sig = jax.nn.sigmoid(gates)
        g = jnp.tanh(gates[:, 2 * H:3 * H])
        c_new = sig[:, H:2 * H] * c + sig[:, 0:H] * g
        h_new = sig[:, 3 * H:4 * H] * jnp.tanh(c_new)
        return h_new, c_new

    z = jnp.zeros((B_, H), jnp.float32)

    # ---- fused fwd/bwd recurrence, fully unrolled (T is small & static) ----
    def step(t, carry):
        h_f, c_f, h_b, c_b, s_f, s_b = carry
        tb = T_ - 1 - t
        xg_f = xpf_ref[pl.ds(t * B_, B_), :]
        xg_b = xpb_ref[pl.ds(tb * B_, B_), :]
        h_f, c_f = cell(xg_f, h_f, c_f, whh_f)
        h_b, c_b = cell(xg_b, h_b, c_b, whh_b)
        h_slab[pl.ds(t * B_, B_), :H] = h_f
        h_slab[pl.ds(tb * B_, B_), H:] = h_b
        return (h_f, c_f, h_b, c_b, s_f + h_f, s_b + h_b)

    carry = jax.lax.fori_loop(0, T_, step, (z, z, z, z, z, z), unroll=True)
    s_f, s_b = carry[4], carry[5]

    # ---- fc_pressure head: per-timestep MLP on the (T*B, 2H) slab ----
    h_all = h_slab[...].astype(jnp.bfloat16)
    z1 = jnp.maximum(
        jnp.dot(h_all, w1p_ref[...], preferred_element_type=jnp.float32)
        + b1p_ref[...], 0.0)
    press = (jnp.dot(z1.astype(jnp.bfloat16), w2p_ref[...],
                     preferred_element_type=jnp.float32) + b2p_ref[...])
    if FINAL_RELU:
        press = jnp.maximum(press, 0.0)
    press_ref[...] = press

    # ---- AdaptiveAvgPool1d(1) over time (accumulated in-loop), then fc_RC head ----
    pooled = (jnp.concatenate([s_f, s_b], axis=-1) * (1.0 / T_)).astype(jnp.bfloat16)
    z2 = jnp.maximum(
        jnp.dot(pooled, w1r_ref[...], preferred_element_type=jnp.float32)
        + b1r_ref[...], 0.0)
    rc = (jnp.dot(z2.astype(jnp.bfloat16), w2r_ref[...],
                  preferred_element_type=jnp.float32) + b2r_ref[...])
    if FINAL_RELU:
        rc = jnp.maximum(rc, 0.0)
    rc_ref[...] = rc


def init_params(key):
    ks = list(jax.random.split(key, 24))
    nk = iter(ks)

    def uniform(k, shape, scale):
        return jax.random.uniform(k, shape, jnp.float32, -scale, scale)

    k_lstm = 1.0 / jnp.sqrt(HIDDEN)
    params = {
        # embedding tables (like nn.Embedding: N(0,1))
        'emb': [jax.random.normal(next(nk), (n, d), jnp.float32) for n, d in EMB_SPECS],
        # bidirectional LSTM, stored pre-transposed: W_ih (D,4H), W_hh (H,4H), fused bias (1,4H)
        'wih_f': uniform(next(nk), (D_IN, 4 * HIDDEN), k_lstm),
        'whh_f': uniform(next(nk), (HIDDEN, 4 * HIDDEN), k_lstm),
        'b_f': (uniform(next(nk), (1, 4 * HIDDEN), k_lstm)
                + uniform(next(nk), (1, 4 * HIDDEN), k_lstm)),
        'wih_b': uniform(next(nk), (D_IN, 4 * HIDDEN), k_lstm),
        'whh_b': uniform(next(nk), (HIDDEN, 4 * HIDDEN), k_lstm),
        'b_b': (uniform(next(nk), (1, 4 * HIDDEN), k_lstm)
                + uniform(next(nk), (1, 4 * HIDDEN), k_lstm)),
    }
    # fc_pressure: 2H -> 512 -> OUTPUT_DIM   (Linear weights stored as (in, out))
    k1 = 1.0 / jnp.sqrt(2 * HIDDEN)
    k2 = 1.0 / jnp.sqrt(FC_HIDDEN)
    params['w1p'] = uniform(next(nk), (2 * HIDDEN, FC_HIDDEN), k1)
    params['b1p'] = uniform(next(nk), (1, FC_HIDDEN), k1)
    params['w2p'] = uniform(next(nk), (FC_HIDDEN, OUTPUT_DIM), k2)
    params['b2p'] = uniform(next(nk), (1, OUTPUT_DIM), k2)
    # fc_RC: 2H -> 512 -> 9
    params['w1r'] = uniform(next(nk), (2 * HIDDEN, FC_HIDDEN), k1)
    params['b1r'] = uniform(next(nk), (1, FC_HIDDEN), k1)
    params['w2r'] = uniform(next(nk), (FC_HIDDEN, RC_DIM), k2)
    params['b2r'] = uniform(next(nk), (1, RC_DIM), k2)
    return params


def forward(params, x_cat, x_num):
    # --- glue: embedding lookups + feature concat (plain JAX), time-major flatten ---
    embs = [jnp.take(tbl, x_cat[:, :, i], axis=0) for i, tbl in enumerate(params['emb'])]
    x = jnp.concatenate([x_num.astype(jnp.float32)] + embs, axis=-1)    # (B, T, D)
    Bx, Tx, Dx = x.shape
    x2d = jnp.transpose(x, (1, 0, 2)).reshape(Tx * Bx, Dx)              # row = t*B + b

    bf = lambda w: w.astype(jnp.bfloat16)
    wih_cat = bf(jnp.concatenate([params['wih_f'], params['wih_b']], axis=-1))  # (D, 8H)
    b_cat = jnp.concatenate([params['b_f'], params['b_b']], axis=-1)            # (1, 8H)

    vmem = pl.BlockSpec(memory_space=pltpu.MemorySpace.VMEM)
    kern_inputs = [
        x2d, wih_cat, b_cat, bf(params['whh_f']), bf(params['whh_b']),
        bf(params['w1p']), params['b1p'], bf(params['w2p']), params['b2p'],
        bf(params['w1r']), params['b1r'], bf(params['w2r']), params['b2r'],
    ]
    press2d, rc = pl.pallas_call(
        lstm_mlc_kernel,
        out_shape=(
            jax.ShapeDtypeStruct((Tx * Bx, OUTPUT_DIM), jnp.float32),
            jax.ShapeDtypeStruct((Bx, RC_DIM), jnp.float32),
        ),
        in_specs=[vmem] * len(kern_inputs),
        out_specs=(vmem, vmem),
        scratch_shapes=[pltpu.VMEM((Tx * Bx, 4 * HIDDEN), jnp.float32),   # xproj fwd
                        pltpu.VMEM((Tx * Bx, 4 * HIDDEN), jnp.float32),   # xproj bwd
                        pltpu.VMEM((Tx * Bx, 2 * HIDDEN), jnp.float32)],  # hidden slab
    )(*kern_inputs)

    pred_pressure = jnp.transpose(press2d.reshape(Tx, Bx, OUTPUT_DIM), (1, 0, 2))
    return {'pred_pressure': pred_pressure,   # (B, T, OUTPUT_DIM)
            'pred_RC': rc}                    # (B, 9)


if __name__ == "__main__":
    key = jax.random.PRNGKey(0)
    pkey, k_cat0, k_cat1, k_num = jax.random.split(key, 4)
    params = init_params(pkey)

    x_cat = jnp.stack(
        [jax.random.randint(k_cat0, (B, T), 0, EMB_SPECS[0][0]),
         jax.random.randint(k_cat1, (B, T), 0, EMB_SPECS[1][0])],
        axis=-1).astype(jnp.int32)                                  # (B, T, 2)
    x_num = jax.random.normal(k_num, (B, T, N_NUM), jnp.float32)    # (B, T, 4)

    out = jax.jit(forward)(params, x_cat, x_num)
    out = jax.tree_util.tree_map(jax.block_until_ready, out)

    assert out['pred_pressure'].shape == (B, T, OUTPUT_DIM)
    assert out['pred_RC'].shape == (B, RC_DIM)
    print("KERNEL_OK")
</pallas_src>

<mosaic_0001>
module attributes {stable_mosaic.version = 11 : i64} {
  func.func @lstm_mlc_kernel(%arg0: memref<16x20xf32, #tpu.memory_space<vmem>>, %arg1: memref<20x256xbf16, #tpu.memory_space<vmem>>, %arg2: memref<1x256xf32, #tpu.memory_space<vmem>>, %arg3: memref<32x128xbf16, #tpu.memory_space<vmem>>, %arg4: memref<32x128xbf16, #tpu.memory_space<vmem>>, %arg5: memref<64x512xbf16, #tpu.memory_space<vmem>>, %arg6: memref<1x512xf32, #tpu.memory_space<vmem>>, %arg7: memref<512x8xbf16, #tpu.memory_space<vmem>>, %arg8: memref<1x8xf32, #tpu.memory_space<vmem>>, %arg9: memref<64x512xbf16, #tpu.memory_space<vmem>>, %arg10: memref<1x512xf32, #tpu.memory_space<vmem>>, %arg11: memref<512x9xbf16, #tpu.memory_space<vmem>>, %arg12: memref<1x9xf32, #tpu.memory_space<vmem>>, %arg13: memref<16x8xf32, #tpu.memory_space<vmem>>, %arg14: memref<2x9xf32, #tpu.memory_space<vmem>>, %arg15: memref<16x128xf32, #tpu.memory_space<vmem>>, %arg16: memref<16x128xf32, #tpu.memory_space<vmem>>, %arg17: memref<16x64xf32, #tpu.memory_space<vmem>>) attributes {dimension_semantics = [], scalar_prefetch = 0 : i64, scratch_operands = 3 : i64, tpu.core_type = #tpu.core_type<tc>} {
    %c0 = arith.constant 0 : index
    %c0_0 = arith.constant 0 : index
    %0 = vector.load %arg0[%c0, %c0_0] : memref<16x20xf32, #tpu.memory_space<vmem>>, vector<16x20xf32>
    %1 = arith.truncf %0 : vector<16x20xf32> to vector<16x20xbf16>
    %c0_1 = arith.constant 0 : index
    %c0_2 = arith.constant 0 : index
    %2 = vector.load %arg1[%c0_1, %c0_2] : memref<20x256xbf16, #tpu.memory_space<vmem>>, vector<20x256xbf16>
    %cst = arith.constant dense<0.000000e+00> : vector<16x256xf32>
    %3 = tpu.matmul %1, %2, %cst {dimension_numbers = #tpu.dot_dimension_numbers<[1], [0], [0], [1], [0, 0, 1, 1], [], []>} : vector<16x20xbf16>, vector<20x256xbf16>, vector<16x256xf32> -> vector<16x256xf32>
    %c0_3 = arith.constant 0 : index
    %c0_4 = arith.constant 0 : index
    %4 = vector.load %arg2[%c0_3, %c0_4] : memref<1x256xf32, #tpu.memory_space<vmem>>, vector<1x256xf32>
    %5 = vector.broadcast %4 : vector<1x256xf32> to vector<16x256xf32>
    %6 = arith.addf %3, %5 : vector<16x256xf32>
    %7 = vector.extract_strided_slice %6 {offsets = [0, 0], sizes = [16, 128], strides = [1, 1]} : vector<16x256xf32> to vector<16x128xf32>
    %c0_5 = arith.constant 0 : index
    %c0_6 = arith.constant 0 : index
    %8 = vector.load %arg15[%c0_5, %c0_6] : memref<16x128xf32, #tpu.memory_space<vmem>>, vector<16x128xf32>
    tpu.vector_store %arg15[%c0_5, %c0_6], %7 {strides = array<i32>} : memref<16x128xf32, #tpu.memory_space<vmem>>, vector<16x128xf32>,
    %9 = vector.extract_strided_slice %6 {offsets = [0, 128], sizes = [16, 128], strides = [1, 1]} : vector<16x256xf32> to vector<16x128xf32>
    %c0_7 = arith.constant 0 : index
    %c0_8 = arith.constant 0 : index
    %10 = vector.load %arg16[%c0_7, %c0_8] : memref<16x128xf32, #tpu.memory_space<vmem>>, vector<16x128xf32>
    tpu.vector_store %arg16[%c0_7, %c0_8], %9 {strides = array<i32>} : memref<16x128xf32, #tpu.memory_space<vmem>>, vector<16x128xf32>,
    %c0_9 = arith.constant 0 : index
    %c0_10 = arith.constant 0 : index
    %11 = vector.load %arg3[%c0_9, %c0_10] : memref<32x128xbf16, #tpu.memory_space<vmem>>, vector<32x128xbf16>
    %c0_11 = arith.constant 0 : index
    %c0_12 = arith.constant 0 : index
    %12 = vector.load %arg4[%c0_11, %c0_12] : memref<32x128xbf16, #tpu.memory_space<vmem>>, vector<32x128xbf16>
    %cst_13 = arith.constant 0.000000e+00 : f32
    %13 = vector.broadcast %cst_13 : f32 to vector<2x32xf32>
    %c0_i32 = arith.constant 0 : i32
    %c7_i32 = arith.constant 7 : i32
    %14 = arith.subi %c7_i32, %c0_i32 : i32
    %c2_i32 = arith.constant 2 : i32
    %15 = arith.muli %c0_i32, %c2_i32 : i32
    %16 = arith.index_cast %15 : i32 to index
    %c0_14 = arith.constant 0 : index
    %17 = vector.load %arg15[%16, %c0_14] : memref<16x128xf32, #tpu.memory_space<vmem>>, vector<2x128xf32>
    %c2_i32_15 = arith.constant 2 : i32
    %18 = arith.muli %14, %c2_i32_15 : i32
    %19 = arith.index_cast %18 : i32 to index
    %c0_16 = arith.constant 0 : index
    %20 = vector.load %arg16[%19, %c0_16] : memref<16x128xf32, #tpu.memory_space<vmem>>, vector<2x128xf32>
    %21 = arith.truncf %13 : vector<2x32xf32> to vector<2x32xbf16>
    %cst_17 = arith.constant dense<0.000000e+00> : vector<2x128xf32>
    %22 = tpu.matmul %21, %11, %cst_17 {dimension_numbers = #tpu.dot_dimension_numbers<[1], [0], [0], [1], [0, 0, 1, 1], [], []>} : vector<2x32xbf16>, vector<32x128xbf16>, vector<2x128xf32> -> vector<2x128xf32>
    %23 = arith.addf %17, %22 : vector<2x128xf32>
    %24 = arith.negf %23 : vector<2x128xf32>
    %25 = math.exp %24 : vector<2x128xf32>
    %cst_18 = arith.constant 1.000000e+00 : f32
    %26 = vector.broadcast %cst_18 : f32 to vector<2x128xf32>
    %27 = arith.addf %26, %25 : vector<2x128xf32>
    %28 = arith.divf %26, %27 : vector<2x128xf32>
    %29 = vector.extract_strided_slice %23 {offsets = [0, 64], sizes = [2, 32], strides = [1, 1]} : vector<2x128xf32> to vector<2x32xf32>
    %30 = math.tanh %29 : vector<2x32xf32>
    %31 = vector.extract_strided_slice %28 {offsets = [0, 32], sizes = [2, 32], strides = [1, 1]} : vector<2x128xf32> to vector<2x32xf32>
    %32 = arith.mulf %31, %13 : vector<2x32xf32>
    %33 = vector.extract_strided_slice %28 {offsets = [0, 0], sizes = [2, 32], strides = [1, 1]} : vector<2x128xf32> to vector<2x32xf32>
    %34 = arith.mulf %33, %30 : vector<2x32xf32>
    %35 = arith.addf %32, %34 : vector<2x32xf32>
    %36 = vector.extract_strided_slice %28 {offsets = [0, 96], sizes = [2, 32], strides = [1, 1]} : vector<2x128xf32> to vector<2x32xf32>
    %37 = math.tanh %35 : vector<2x32xf32>
    %38 = arith.mulf %36, %37 : vector<2x32xf32>
    %39 = arith.truncf %13 : vector<2x32xf32> to vector<2x32xbf16>
    %cst_19 = arith.constant dense<0.000000e+00> : vector<2x128xf32>
    %40 = tpu.matmul %39, %12, %cst_19 {dimension_numbers = #tpu.dot_dimension_numbers<[1], [0], [0], [1], [0, 0, 1, 1], [], []>} : vector<2x32xbf16>, vector<32x128xbf16>, vector<2x128xf32> -> vector<2x128xf32>
    %41 = arith.addf %20, %40 : vector<2x128xf32>
    %42 = arith.negf %41 : vector<2x128xf32>
    %43 = math.exp %42 : vector<2x128xf32>
    %cst_20 = arith.constant 1.000000e+00 : f32
    %44 = vector.broadcast %cst_20 : f32 to vector<2x128xf32>
    %45 = arith.addf %44, %43 : vector<2x128xf32>
    %46 = arith.divf %44, %45 : vector<2x128xf32>
    %47 = vector.extract_strided_slice %41 {offsets = [0, 64], sizes = [2, 32], strides = [1, 1]} : vector<2x128xf32> to vector<2x32xf32>
    %48 = math.tanh %47 : vector<2x32xf32>
    %49 = vector.extract_strided_slice %46 {offsets = [0, 32], sizes = [2, 32], strides = [1, 1]} : vector<2x128xf32> to vector<2x32xf32>
    %50 = arith.mulf %49, %13 : vector<2x32xf32>
    %51 = vector.extract_strided_slice %46 {offsets = [0, 0], sizes = [2, 32], strides = [1, 1]} : vector<2x128xf32> to vector<2x32xf32>
    %52 = arith.mulf %51, %48 : vector<2x32xf32>
    %53 = arith.addf %50, %52 : vector<2x32xf32>
    %54 = vector.extract_strided_slice %46 {offsets = [0, 96], sizes = [2, 32], strides = [1, 1]} : vector<2x128xf32> to vector<2x32xf32>
    %55 = math.tanh %53 : vector<2x32xf32>
    %56 = arith.mulf %54, %55 : vector<2x32xf32>
    %c2_i32_21 = arith.constant 2 : i32
    %57 = arith.muli %c0_i32, %c2_i32_21 : i32
    %58 = arith.index_cast %57 : i32 to index
    %c0_22 = arith.constant 0 : index
    %59 = vector.load %arg17[%58, %c0_22] : memref<16x64xf32, #tpu.memory_space<vmem>>, vector<2x32xf32>
    tpu.vector_store %arg17[%58, %c0_22], %38 {strides = array<i32>} : memref<16x64xf32, #tpu.memory_space<vmem>>, vector<2x32xf32>,
    %c2_i32_23 = arith.constant 2 : i32
    %60 = arith.muli %14, %c2_i32_23 : i32
    %61 = arith.index_cast %60 : i32 to index
    %c32 = arith.constant 32 : index
    %62 = vector.load %arg17[%61, %c32] : memref<16x64xf32, #tpu.memory_space<vmem>>, vector<2x32xf32>
    tpu.vector_store %arg17[%61, %c32], %56 {strides = array<i32>} : memref<16x64xf32, #tpu.memory_space<vmem>>, vector<2x32xf32>,
    %63 = arith.addf %13, %38 : vector<2x32xf32>
    %64 = arith.addf %13, %56 : vector<2x32xf32>
    %c1_i32 = arith.constant 1 : i32
    %c7_i32_24 = arith.constant 7 : i32
    %65 = arith.subi %c7_i32_24, %c1_i32 : i32
    %c2_i32_25 = arith.constant 2 : i32
    %66 = arith.muli %c1_i32, %c2_i32_25 : i32
    %67 = arith.index_cast %66 : i32 to index
    %c0_26 = arith.constant 0 : index
    %68 = vector.load %arg15[%67, %c0_26] : memref<16x128xf32, #tpu.memory_space<vmem>>, vector<2x128xf32>
    %c2_i32_27 = arith.constant 2 : i32
    %69 = arith.muli %65, %c2_i32_27 : i32
    %70 = arith.index_cast %69 : i32 to index
    %c0_28 = arith.constant 0 : index
    %71 = vector.load %arg16[%70, %c0_28] : memref<16x128xf32, #tpu.memory_space<vmem>>, vector<2x128xf32>
    %72 = arith.truncf %38 : vector<2x32xf32> to vector<2x32xbf16>
    %cst_29 = arith.constant dense<0.000000e+00> : vector<2x128xf32>
    %73 = tpu.matmul %72, %11, %cst_29 {dimension_numbers = #tpu.dot_dimension_numbers<[1], [0], [0], [1], [0, 0, 1, 1], [], []>} : vector<2x32xbf16>, vector<32x128xbf16>, vector<2x128xf32> -> vector<2x128xf32>
    %74 = arith.addf %68, %73 : vector<2x128xf32>
    %75 = arith.negf %74 : vector<2x128xf32>
    %76 = math.exp %75 : vector<2x128xf32>
    %cst_30 = arith.constant 1.000000e+00 : f32
    %77 = vector.broadcast %cst_30 : f32 to vector<2x128xf32>
    %78 = arith.addf %77, %76 : vector<2x128xf32>
    %79 = arith.divf %77, %78 : vector<2x128xf32>
    %80 = vector.extract_strided_slice %74 {offsets = [0, 64], sizes = [2, 32], strides = [1, 1]} : vector<2x128xf32> to vector<2x32xf32>
    %81 = math.tanh %80 : vector<2x32xf32>
    %82 = vector.extract_strided_slice %79 {offsets = [0, 32], sizes = [2, 32], strides = [1, 1]} : vector<2x128xf32> to vector<2x32xf32>
    %83 = arith.mulf %82, %35 : vector<2x32xf32>
    %84 = vector.extract_strided_slice %79 {offsets = [0, 0], sizes = [2, 32], strides = [1, 1]} : vector<2x128xf32> to vector<2x32xf32>
    %85 = arith.mulf %84, %81 : vector<2x32xf32>
    %86 = arith.addf %83, %85 : vector<2x32xf32>
    %87 = vector.extract_strided_slice %79 {offsets = [0, 96], sizes = [2, 32], strides = [1, 1]} : vector<2x128xf32> to vector<2x32xf32>
    %88 = math.tanh %86 : vector<2x32xf32>
    %89 = arith.mulf %87, %88 : vector<2x32xf32>
    %90 = arith.truncf %56 : vector<2x32xf32> to vector<2x32xbf16>
    %cst_31 = arith.constant dense<0.000000e+00> : vector<2x128xf32>
    %91 = tpu.matmul %90, %12, %cst_31 {dimension_numbers = #tpu.dot_dimension_numbers<[1], [0], [0], [1], [0, 0, 1, 1], [], []>} : vector<2x32xbf16>, vector<32x128xbf16>, vector<2x128xf32> -> vector<2x128xf32>
    %92 = arith.addf %71, %91 : vector<2x128xf32>
    %93 = arith.negf %92 : vector<2x128xf32>
    %94 = math.exp %93 : vector<2x128xf32>
    %cst_32 = arith.constant 1.000000e+00 : f32
    %95 = vector.broadcast %cst_32 : f32 to vector<2x128xf32>
    %96 = arith.addf %95, %94 : vector<2x128xf32>
    %97 = arith.divf %95, %96 : vector<2x128xf32>
    %98 = vector.extract_strided_slice %92 {offsets = [0, 64], sizes = [2, 32], strides = [1, 1]} : vector<2x128xf32> to vector<2x32xf32>
    %99 = math.tanh %98 : vector<2x32xf32>
    %100 = vector.extract_strided_slice %97 {offsets = [0, 32], sizes = [2, 32], strides = [1, 1]} : vector<2x128xf32> to vector<2x32xf32>
    %101 = arith.mulf %100, %53 : vector<2x32xf32>
    %102 = vector.extract_strided_slice %97 {offsets = [0, 0], sizes = [2, 32], strides = [1, 1]} : vector<2x128xf32> to vector<2x32xf32>
    %103 = arith.mulf %102, %99 : vector<2x32xf32>
    %104 = arith.addf %101, %103 : vector<2x32xf32>
    %105 = vector.extract_strided_slice %97 {offsets = [0, 96], sizes = [2, 32], strides = [1, 1]} : vector<2x128xf32> to vector<2x32xf32>
    %106 = math.tanh %104 : vector<2x32xf32>
    %107 = arith.mulf %105, %106 : vector<2x32xf32>
    %c2_i32_33 = arith.constant 2 : i32
    %108 = arith.muli %c1_i32, %c2_i32_33 : i32
    %109 = arith.index_cast %108 : i32 to index
    %c0_34 = arith.constant 0 : index
    %110 = vector.load %arg17[%109, %c0_34] : memref<16x64xf32, #tpu.memory_space<vmem>>, vector<2x32xf32>
    tpu.vector_store %arg17[%109, %c0_34], %89 {strides = array<i32>} : memref<16x64xf32, #tpu.memory_space<vmem>>, vector<2x32xf32>,
    %c2_i32_35 = arith.constant 2 : i32
    %111 = arith.muli %65, %c2_i32_35 : i32
    %112 = arith.index_cast %111 : i32 to index
    %c32_36 = arith.constant 32 : index
    %113 = vector.load %arg17[%112, %c32_36] : memref<16x64xf32, #tpu.memory_space<vmem>>, vector<2x32xf32>
    tpu.vector_store %arg17[%112, %c32_36], %107 {strides = array<i32>} : memref<16x64xf32, #tpu.memory_space<vmem>>, vector<2x32xf32>,
    %114 = arith.addf %63, %89 : vector<2x32xf32>
    %115 = arith.addf %64, %107 : vector<2x32xf32>
    %c2_i32_37 = arith.constant 2 : i32
    %c7_i32_38 = arith.constant 7 : i32
    %116 = arith.subi %c7_i32_38, %c2_i32_37 : i32
    %c2_i32_39 = arith.constant 2 : i32
    %117 = arith.muli %c2_i32_37, %c2_i32_39 : i32
    %118 = arith.index_cast %117 : i32 to index
    %c0_40 = arith.constant 0 : index
    %119 = vector.load %arg15[%118, %c0_40] : memref<16x128xf32, #tpu.memory_space<vmem>>, vector<2x128xf32>
    %c2_i32_41 = arith.constant 2 : i32
    %120 = arith.muli %116, %c2_i32_41 : i32
    %121 = arith.index_cast %120 : i32 to index
    %c0_42 = arith.constant 0 : index
    %122 = vector.load %arg16[%121, %c0_42] : memref<16x128xf32, #tpu.memory_space<vmem>>, vector<2x128xf32>
    %123 = arith.truncf %89 : vector<2x32xf32> to vector<2x32xbf16>
    %cst_43 = arith.constant dense<0.000000e+00> : vector<2x128xf32>
    %124 = tpu.matmul %123, %11, %cst_43 {dimension_numbers = #tpu.dot_dimension_numbers<[1], [0], [0], [1], [0, 0, 1, 1], [], []>} : vector<2x32xbf16>, vector<32x128xbf16>, vector<2x128xf32> -> vector<2x128xf32>
    %125 = arith.addf %119, %124 : vector<2x128xf32>
    %126 = arith.negf %125 : vector<2x128xf32>
    %127 = math.exp %126 : vector<2x128xf32>
    %cst_44 = arith.constant 1.000000e+00 : f32
    %128 = vector.broadcast %cst_44 : f32 to vector<2x128xf32>
    %129 = arith.addf %128, %127 : vector<2x128xf32>
    %130 = arith.divf %128, %129 : vector<2x128xf32>
    %131 = vector.extract_strided_slice %125 {offsets = [0, 64], sizes = [2, 32], strides = [1, 1]} : vector<2x128xf32> to vector<2x32xf32>
    %132 = math.tanh %131 : vector<2x32xf32>
    %133 = vector.extract_strided_slice %130 {offsets = [0, 32], sizes = [2, 32], strides = [1, 1]} : vector<2x128xf32> to vector<2x32xf32>
    %134 = arith.mulf %133, %86 : vector<2x32xf32>
    %135 = vector.extract_strided_slice %130 {offsets = [0, 0], sizes = [2, 32], strides = [1, 1]} : vector<2x128xf32> to vector<2x32xf32>
    %136 = arith.mulf %135, %132 : vector<2x32xf32>
    %137 = arith.addf %134, %136 : vector<2x32xf32>
    %138 = vector.extract_strided_slice %130 {offsets = [0, 96], sizes = [2, 32], strides = [1, 1]} : vector<2x128xf32> to vector<2x32xf32>
    %139 = math.tanh %137 : vector<2x32xf32>
    %140 = arith.mulf %138, %139 : vector<2x32xf32>
    %141 = arith.truncf %107 : vector<2x32xf32> to vector<2x32xbf16>
    %cst_45 = arith.constant dense<0.000000e+00> : vector<2x128xf32>
    %142 = tpu.matmul %141, %12, %cst_45 {dimension_numbers = #tpu.dot_dimension_numbers<[1], [0], [0], [1], [0, 0, 1, 1], [], []>} : vector<2x32xbf16>, vector<32x128xbf16>, vector<2x128xf32> -> vector<2x128xf32>
    %143 = arith.addf %122, %142 : vector<2x128xf32>
    %144 = arith.negf %143 : vector<2x128xf32>
    %145 = math.exp %144 : vector<2x128xf32>
    %cst_46 = arith.constant 1.000000e+00 : f32
    %146 = vector.broadcast %cst_46 : f32 to vector<2x128xf32>
    %147 = arith.addf %146, %145 : vector<2x128xf32>
    %148 = arith.divf %146, %147 : vector<2x128xf32>
    %149 = vector.extract_strided_slice %143 {offsets = [0, 64], sizes = [2, 32], strides = [1, 1]} : vector<2x128xf32> to vector<2x32xf32>
    %150 = math.tanh %149 : vector<2x32xf32>
    %151 = vector.extract_strided_slice %148 {offsets = [0, 32], sizes = [2, 32], strides = [1, 1]} : vector<2x128xf32> to vector<2x32xf32>
    %152 = arith.mulf %151, %104 : vector<2x32xf32>
    %153 = vector.extract_strided_slice %148 {offsets = [0, 0], sizes = [2, 32], strides = [1, 1]} : vector<2x128xf32> to vector<2x32xf32>
    %154 = arith.mulf %153, %150 : vector<2x32xf32>
    %155 = arith.addf %152, %154 : vector<2x32xf32>
    %156 = vector.extract_strided_slice %148 {offsets = [0, 96], sizes = [2, 32], strides = [1, 1]} : vector<2x128xf32> to vector<2x32xf32>
    %157 = math.tanh %155 : vector<2x32xf32>
    %158 = arith.mulf %156, %157 : vector<2x32xf32>
    %c2_i32_47 = arith.constant 2 : i32
    %159 = arith.muli %c2_i32_37, %c2_i32_47 : i32
    %160 = arith.index_cast %159 : i32 to index
    %c0_48 = arith.constant 0 : index
    %161 = vector.load %arg17[%160, %c0_48] : memref<16x64xf32, #tpu.memory_space<vmem>>, vector<2x32xf32>
    tpu.vector_store %arg17[%160, %c0_48], %140 {strides = array<i32>} : memref<16x64xf32, #tpu.memory_space<vmem>>, vector<2x32xf32>,
    %c2_i32_49 = arith.constant 2 : i32
    %162 = arith.muli %116, %c2_i32_49 : i32
    %163 = arith.index_cast %162 : i32 to index
    %c32_50 = arith.constant 32 : index
    %164 = vector.load %arg17[%163, %c32_50] : memref<16x64xf32, #tpu.memory_space<vmem>>, vector<2x32xf32>
    tpu.vector_store %arg17[%163, %c32_50], %158 {strides = array<i32>} : memref<16x64xf32, #tpu.memory_space<vmem>>, vector<2x32xf32>,
    %165 = arith.addf %114, %140 : vector<2x32xf32>
    %166 = arith.addf %115, %158 : vector<2x32xf32>
    %c3_i32 = arith.constant 3 : i32
    %c7_i32_51 = arith.constant 7 : i32
    %167 = arith.subi %c7_i32_51, %c3_i32 : i32
    %c2_i32_52 = arith.constant 2 : i32
    %168 = arith.muli %c3_i32, %c2_i32_52 : i32
    %169 = arith.index_cast %168 : i32 to index
    %c0_53 = arith.constant 0 : index
    %170 = vector.load %arg15[%169, %c0_53] : memref<16x128xf32, #tpu.memory_space<vmem>>, vector<2x128xf32>
    %c2_i32_54 = arith.constant 2 : i32
    %171 = arith.muli %167, %c2_i32_54 : i32
    %172 = arith.index_cast %171 : i32 to index
    %c0_55 = arith.constant 0 : index
    %173 = vector.load %arg16[%172, %c0_55] : memref<16x128xf32, #tpu.memory_space<vmem>>, vector<2x128xf32>
    %174 = arith.truncf %140 : vector<2x32xf32> to vector<2x32xbf16>
    %cst_56 = arith.constant dense<0.000000e+00> : vector<2x128xf32>
    %175 = tpu.matmul %174, %11, %cst_56 {dimension_numbers = #tpu.dot_dimension_numbers<[1], [0], [0], [1], [0, 0, 1, 1], [], []>} : vector<2x32xbf16>, vector<32x128xbf16>, vector<2x128xf32> -> vector<2x128xf32>
    %176 = arith.addf %170, %175 : vector<2x128xf32>
    %177 = arith.negf %176 : vector<2x128xf32>
    %178 = math.exp %177 : vector<2x128xf32>
    %cst_57 = arith.constant 1.000000e+00 : f32
    %179 = vector.broadcast %cst_57 : f32 to vector<2x128xf32>
    %180 = arith.addf %179, %178 : vector<2x128xf32>
    %181 = arith.divf %179, %180 : vector<2x128xf32>
    %182 = vector.extract_strided_slice %176 {offsets = [0, 64], sizes = [2, 32], strides = [1, 1]} : vector<2x128xf32> to vector<2x32xf32>
    %183 = math.tanh %182 : vector<2x32xf32>
    %184 = vector.extract_strided_slice %181 {offsets = [0, 32], sizes = [2, 32], strides = [1, 1]} : vector<2x128xf32> to vector<2x32xf32>
    %185 = arith.mulf %184, %137 : vector<2x32xf32>
    %186 = vector.extract_strided_slice %181 {offsets = [0, 0], sizes = [2, 32], strides = [1, 1]} : vector<2x128xf32> to vector<2x32xf32>
    %187 = arith.mulf %186, %183 : vector<2x32xf32>
    %188 = arith.addf %185, %187 : vector<2x32xf32>
    %189 = vector.extract_strided_slice %181 {offsets = [0, 96], sizes = [2, 32], strides = [1, 1]} : vector<2x128xf32> to vector<2x32xf32>
    %190 = math.tanh %188 : vector<2x32xf32>
    %191 = arith.mulf %189, %190 : vector<2x32xf32>
    %192 = arith.truncf %158 : vector<2x32xf32> to vector<2x32xbf16>
    %cst_58 = arith.constant dense<0.000000e+00> : vector<2x128xf32>
    %193 = tpu.matmul %192, %12, %cst_58 {dimension_numbers = #tpu.dot_dimension_numbers<[1], [0], [0], [1], [0, 0, 1, 1], [], []>} : vector<2x32xbf16>, vector<32x128xbf16>, vector<2x128xf32> -> vector<2x128xf32>
    %194 = arith.addf %173, %193 : vector<2x128xf32>
    %195 = arith.negf %194 : vector<2x128xf32>
    %196 = math.exp %195 : vector<2x128xf32>
    %cst_59 = arith.constant 1.000000e+00 : f32
    %197 = vector.broadcast %cst_59 : f32 to vector<2x128xf32>
    %198 = arith.addf %197, %196 : vector<2x128xf32>
    %199 = arith.divf %197, %198 : vector<2x128xf32>
    %200 = vector.extract_strided_slice %194 {offsets = [0, 64], sizes = [2, 32], strides = [1, 1]} : vector<2x128xf32> to vector<2x32xf32>
    %201 = math.tanh %200 : vector<2x32xf32>
    %202 = vector.extract_strided_slice %199 {offsets = [0, 32], sizes = [2, 32], strides = [1, 1]} : vector<2x128xf32> to vector<2x32xf32>
    %203 = arith.mulf %202, %155 : vector<2x32xf32>
    %204 = vector.extract_strided_slice %199 {offsets = [0, 0], sizes = [2, 32], strides = [1, 1]} : vector<2x128xf32> to vector<2x32xf32>
    %205 = arith.mulf %204, %201 : vector<2x32xf32>
    %206 = arith.addf %203, %205 : vector<2x32xf32>
    %207 = vector.extract_strided_slice %199 {offsets = [0, 96], sizes = [2, 32], strides = [1, 1]} : vector<2x128xf32> to vector<2x32xf32>
    %208 = math.tanh %206 : vector<2x32xf32>
    %209 = arith.mulf %207, %208 : vector<2x32xf32>
    %c2_i32_60 = arith.constant 2 : i32
    %210 = arith.muli %c3_i32, %c2_i32_60 : i32
    %211 = arith.index_cast %210 : i32 to index
    %c0_61 = arith.constant 0 : index
    %212 = vector.load %arg17[%211, %c0_61] : memref<16x64xf32, #tpu.memory_space<vmem>>, vector<2x32xf32>
    tpu.vector_store %arg17[%211, %c0_61], %191 {strides = array<i32>} : memref<16x64xf32, #tpu.memory_space<vmem>>, vector<2x32xf32>,
    %c2_i32_62 = arith.constant 2 : i32
    %213 = arith.muli %167, %c2_i32_62 : i32
    %214 = arith.index_cast %213 : i32 to index
    %c32_63 = arith.constant 32 : index
    %215 = vector.load %arg17[%214, %c32_63] : memref<16x64xf32, #tpu.memory_space<vmem>>, vector<2x32xf32>
    tpu.vector_store %arg17[%214, %c32_63], %209 {strides = array<i32>} : memref<16x64xf32, #tpu.memory_space<vmem>>, vector<2x32xf32>,
    %216 = arith.addf %165, %191 : vector<2x32xf32>
    %217 = arith.addf %166, %209 : vector<2x32xf32>
    %c4_i32 = arith.constant 4 : i32
    %c7_i32_64 = arith.constant 7 : i32
    %218 = arith.subi %c7_i32_64, %c4_i32 : i32
    %c2_i32_65 = arith.constant 2 : i32
    %219 = arith.muli %c4_i32, %c2_i32_65 : i32
    %220 = arith.index_cast %219 : i32 to index
    %c0_66 = arith.constant 0 : index
    %221 = vector.load %arg15[%220, %c0_66] : memref<16x128xf32, #tpu.memory_space<vmem>>, vector<2x128xf32>
    %c2_i32_67 = arith.constant 2 : i32
    %222 = arith.muli %218, %c2_i32_67 : i32
    %223 = arith.index_cast %222 : i32 to index
    %c0_68 = arith.constant 0 : index
    %224 = vector.load %arg16[%223, %c0_68] : memref<16x128xf32, #tpu.memory_space<vmem>>, vector<2x128xf32>
    %225 = arith.truncf %191 : vector<2x32xf32> to vector<2x32xbf16>
    %cst_69 = arith.constant dense<0.000000e+00> : vector<2x128xf32>
    %226 = tpu.matmul %225, %11, %cst_69 {dimension_numbers = #tpu.dot_dimension_numbers<[1], [0], [0], [1], [0, 0, 1, 1], [], []>} : vector<2x32xbf16>, vector<32x128xbf16>, vector<2x128xf32> -> vector<2x128xf32>
    %227 = arith.addf %221, %226 : vector<2x128xf32>
    %228 = arith.negf %227 : vector<2x128xf32>
    %229 = math.exp %228 : vector<2x128xf32>
    %cst_70 = arith.constant 1.000000e+00 : f32
    %230 = vector.broadcast %cst_70 : f32 to vector<2x128xf32>
    %231 = arith.addf %230, %229 : vector<2x128xf32>
    %232 = arith.divf %230, %231 : vector<2x128xf32>
    %233 = vector.extract_strided_slice %227 {offsets = [0, 64], sizes = [2, 32], strides = [1, 1]} : vector<2x128xf32> to vector<2x32xf32>
    %234 = math.tanh %233 : vector<2x32xf32>
    %235 = vector.extract_strided_slice %232 {offsets = [0, 32], sizes = [2, 32], strides = [1, 1]} : vector<2x128xf32> to vector<2x32xf32>
    %236 = arith.mulf %235, %188 : vector<2x32xf32>
    %237 = vector.extract_strided_slice %232 {offsets = [0, 0], sizes = [2, 32], strides = [1, 1]} : vector<2x128xf32> to vector<2x32xf32>
    %238 = arith.mulf %237, %234 : vector<2x32xf32>
    %239 = arith.addf %236, %238 : vector<2x32xf32>
    %240 = vector.extract_strided_slice %232 {offsets = [0, 96], sizes = [2, 32], strides = [1, 1]} : vector<2x128xf32> to vector<2x32xf32>
    %241 = math.tanh %239 : vector<2x32xf32>
    %242 = arith.mulf %240, %241 : vector<2x32xf32>
    %243 = arith.truncf %209 : vector<2x32xf32> to vector<2x32xbf16>
    %cst_71 = arith.constant dense<0.000000e+00> : vector<2x128xf32>
    %244 = tpu.matmul %243, %12, %cst_71 {dimension_numbers = #tpu.dot_dimension_numbers<[1], [0], [0], [1], [0, 0, 1, 1], [], []>} : vector<2x32xbf16>, vector<32x128xbf16>, vector<2x128xf32> -> vector<2x128xf32>
    %245 = arith.addf %224, %244 : vector<2x128xf32>
    %246 = arith.negf %245 : vector<2x128xf32>
    %247 = math.exp %246 : vector<2x128xf32>
    %cst_72 = arith.constant 1.000000e+00 : f32
    %248 = vector.broadcast %cst_72 : f32 to vector<2x128xf32>
    %249 = arith.addf %248, %247 : vector<2x128xf32>
    %250 = arith.divf %248, %249 : vector<2x128xf32>
    %251 = vector.extract_strided_slice %245 {offsets = [0, 64], sizes = [2, 32], strides = [1, 1]} : vector<2x128xf32> to vector<2x32xf32>
    %252 = math.tanh %251 : vector<2x32xf32>
    %253 = vector.extract_strided_slice %250 {offsets = [0, 32], sizes = [2, 32], strides = [1, 1]} : vector<2x128xf32> to vector<2x32xf32>
    %254 = arith.mulf %253, %206 : vector<2x32xf32>
    %255 = vector.extract_strided_slice %250 {offsets = [0, 0], sizes = [2, 32], strides = [1, 1]} : vector<2x128xf32> to vector<2x32xf32>
    %256 = arith.mulf %255, %252 : vector<2x32xf32>
    %257 = arith.addf %254, %256 : vector<2x32xf32>
    %258 = vector.extract_strided_slice %250 {offsets = [0, 96], sizes = [2, 32], strides = [1, 1]} : vector<2x128xf32> to vector<2x32xf32>
    %259 = math.tanh %257 : vector<2x32xf32>
    %260 = arith.mulf %258, %259 : vector<2x32xf32>
    %c2_i32_73 = arith.constant 2 : i32
    %261 = arith.muli %c4_i32, %c2_i32_73 : i32
    %262 = arith.index_cast %261 : i32 to index
    %c0_74 = arith.constant 0 : index
    %263 = vector.load %arg17[%262, %c0_74] : memref<16x64xf32, #tpu.memory_space<vmem>>, vector<2x32xf32>
    tpu.vector_store %arg17[%262, %c0_74], %242 {strides = array<i32>} : memref<16x64xf32, #tpu.memory_space<vmem>>, vector<2x32xf32>,
    %c2_i32_75 = arith.constant 2 : i32
    %264 = arith.muli %218, %c2_i32_75 : i32
    %265 = arith.index_cast %264 : i32 to index
    %c32_76 = arith.constant 32 : index
    %266 = vector.load %arg17[%265, %c32_76] : memref<16x64xf32, #tpu.memory_space<vmem>>, vector<2x32xf32>
    tpu.vector_store %arg17[%265, %c32_76], %260 {strides = array<i32>} : memref<16x64xf32, #tpu.memory_space<vmem>>, vector<2x32xf32>,
    %267 = arith.addf %216, %242 : vector<2x32xf32>
    %268 = arith.addf %217, %260 : vector<2x32xf32>
    %c5_i32 = arith.constant 5 : i32
    %c7_i32_77 = arith.constant 7 : i32
    %269 = arith.subi %c7_i32_77, %c5_i32 : i32
    %c2_i32_78 = arith.constant 2 : i32
    %270 = arith.muli %c5_i32, %c2_i32_78 : i32
    %271 = arith.index_cast %270 : i32 to index
    %c0_79 = arith.constant 0 : index
    %272 = vector.load %arg15[%271, %c0_79] : memref<16x128xf32, #tpu.memory_space<vmem>>, vector<2x128xf32>
    %c2_i32_80 = arith.constant 2 : i32
    %273 = arith.muli %269, %c2_i32_80 : i32
    %274 = arith.index_cast %273 : i32 to index
    %c0_81 = arith.constant 0 : index
    %275 = vector.load %arg16[%274, %c0_81] : memref<16x128xf32, #tpu.memory_space<vmem>>, vector<2x128xf32>
    %276 = arith.truncf %242 : vector<2x32xf32> to vector<2x32xbf16>
    %cst_82 = arith.constant dense<0.000000e+00> : vector<2x128xf32>
    %277 = tpu.matmul %276, %11, %cst_82 {dimension_numbers = #tpu.dot_dimension_numbers<[1], [0], [0], [1], [0, 0, 1, 1], [], []>} : vector<2x32xbf16>, vector<32x128xbf16>, vector<2x128xf32> -> vector<2x128xf32>
    %278 = arith.addf %272, %277 : vector<2x128xf32>
    %279 = arith.negf %278 : vector<2x128xf32>
    %280 = math.exp %279 : vector<2x128xf32>
    %cst_83 = arith.constant 1.000000e+00 : f32
    %281 = vector.broadcast %cst_83 : f32 to vector<2x128xf32>
    %282 = arith.addf %281, %280 : vector<2x128xf32>
    %283 = arith.divf %281, %282 : vector<2x128xf32>
    %284 = vector.extract_strided_slice %278 {offsets = [0, 64], sizes = [2, 32], strides = [1, 1]} : vector<2x128xf32> to vector<2x32xf32>
    %285 = math.tanh %284 : vector<2x32xf32>
    %286 = vector.extract_strided_slice %283 {offsets = [0, 32], sizes = [2, 32], strides = [1, 1]} : vector<2x128xf32> to vector<2x32xf32>
    %287 = arith.mulf %286, %239 : vector<2x32xf32>
    %288 = vector.extract_strided_slice %283 {offsets = [0, 0], sizes = [2, 32], strides = [1, 1]} : vector<2x128xf32> to vector<2x32xf32>
    %289 = arith.mulf %288, %285 : vector<2x32xf32>
    %290 = arith.addf %287, %289 : vector<2x32xf32>
    %291 = vector.extract_strided_slice %283 {offsets = [0, 96], sizes = [2, 32], strides = [1, 1]} : vector<2x128xf32> to vector<2x32xf32>
    %292 = math.tanh %290 : vector<2x32xf32>
    %293 = arith.mulf %291, %292 : vector<2x32xf32>
    %294 = arith.truncf %260 : vector<2x32xf32> to vector<2x32xbf16>
    %cst_84 = arith.constant dense<0.000000e+00> : vector<2x128xf32>
    %295 = tpu.matmul %294, %12, %cst_84 {dimension_numbers = #tpu.dot_dimension_numbers<[1], [0], [0], [1], [0, 0, 1, 1], [], []>} : vector<2x32xbf16>, vector<32x128xbf16>, vector<2x128xf32> -> vector<2x128xf32>
    %296 = arith.addf %275, %295 : vector<2x128xf32>
    %297 = arith.negf %296 : vector<2x128xf32>
    %298 = math.exp %297 : vector<2x128xf32>
    %cst_85 = arith.constant 1.000000e+00 : f32
    %299 = vector.broadcast %cst_85 : f32 to vector<2x128xf32>
    %300 = arith.addf %299, %298 : vector<2x128xf32>
    %301 = arith.divf %299, %300 : vector<2x128xf32>
    %302 = vector.extract_strided_slice %296 {offsets = [0, 64], sizes = [2, 32], strides = [1, 1]} : vector<2x128xf32> to vector<2x32xf32>
    %303 = math.tanh %302 : vector<2x32xf32>
    %304 = vector.extract_strided_slice %301 {offsets = [0, 32], sizes = [2, 32], strides = [1, 1]} : vector<2x128xf32> to vector<2x32xf32>
    %305 = arith.mulf %304, %257 : vector<2x32xf32>
    %306 = vector.extract_strided_slice %301 {offsets = [0, 0], sizes = [2, 32], strides = [1, 1]} : vector<2x128xf32> to vector<2x32xf32>
    %307 = arith.mulf %306, %303 : vector<2x32xf32>
    %308 = arith.addf %305, %307 : vector<2x32xf32>
    %309 = vector.extract_strided_slice %301 {offsets = [0, 96], sizes = [2, 32], strides = [1, 1]} : vector<2x128xf32> to vector<2x32xf32>
    %310 = math.tanh %308 : vector<2x32xf32>
    %311 = arith.mulf %309, %310 : vector<2x32xf32>
    %c2_i32_86 = arith.constant 2 : i32
    %312 = arith.muli %c5_i32, %c2_i32_86 : i32
    %313 = arith.index_cast %312 : i32 to index
    %c0_87 = arith.constant 0 : index
    %314 = vector.load %arg17[%313, %c0_87] : memref<16x64xf32, #tpu.memory_space<vmem>>, vector<2x32xf32>
    tpu.vector_store %arg17[%313, %c0_87], %293 {strides = array<i32>} : memref<16x64xf32, #tpu.memory_space<vmem>>, vector<2x32xf32>,
    %c2_i32_88 = arith.constant 2 : i32
    %315 = arith.muli %269, %c2_i32_88 : i32
    %316 = arith.index_cast %315 : i32 to index
    %c32_89 = arith.constant 32 : index
    %317 = vector.load %arg17[%316, %c32_89] : memref<16x64xf32, #tpu.memory_space<vmem>>, vector<2x32xf32>
    tpu.vector_store %arg17[%316, %c32_89], %311 {strides = array<i32>} : memref<16x64xf32, #tpu.memory_space<vmem>>, vector<2x32xf32>,
    %318 = arith.addf %267, %293 : vector<2x32xf32>
    %319 = arith.addf %268, %311 : vector<2x32xf32>
    %c6_i32 = arith.constant 6 : i32
    %c7_i32_90 = arith.constant 7 : i32
    %320 = arith.subi %c7_i32_90, %c6_i32 : i32
    %c2_i32_91 = arith.constant 2 : i32
    %321 = arith.muli %c6_i32, %c2_i32_91 : i32
    %322 = arith.index_cast %321 : i32 to index
    %c0_92 = arith.constant 0 : index
    %323 = vector.load %arg15[%322, %c0_92] : memref<16x128xf32, #tpu.memory_space<vmem>>, vector<2x128xf32>
    %c2_i32_93 = arith.constant 2 : i32
    %324 = arith.muli %320, %c2_i32_93 : i32
    %325 = arith.index_cast %324 : i32 to index
    %c0_94 = arith.constant 0 : index
    %326 = vector.load %arg16[%325, %c0_94] : memref<16x128xf32, #tpu.memory_space<vmem>>, vector<2x128xf32>
    %327 = arith.truncf %293 : vector<2x32xf32> to vector<2x32xbf16>
    %cst_95 = arith.constant dense<0.000000e+00> : vector<2x128xf32>
    %328 = tpu.matmul %327, %11, %cst_95 {dimension_numbers = #tpu.dot_dimension_numbers<[1], [0], [0], [1], [0, 0, 1, 1], [], []>} : vector<2x32xbf16>, vector<32x128xbf16>, vector<2x128xf32> -> vector<2x128xf32>
    %329 = arith.addf %323, %328 : vector<2x128xf32>
    %330 = arith.negf %329 : vector<2x128xf32>
    %331 = math.exp %330 : vector<2x128xf32>
    %cst_96 = arith.constant 1.000000e+00 : f32
    %332 = vector.broadcast %cst_96 : f32 to vector<2x128xf32>
    %333 = arith.addf %332, %331 : vector<2x128xf32>
    %334 = arith.divf %332, %333 : vector<2x128xf32>
    %335 = vector.extract_strided_slice %329 {offsets = [0, 64], sizes = [2, 32], strides = [1, 1]} : vector<2x128xf32> to vector<2x32xf32>
    %336 = math.tanh %335 : vector<2x32xf32>
    %337 = vector.extract_strided_slice %334 {offsets = [0, 32], sizes = [2, 32], strides = [1, 1]} : vector<2x128xf32> to vector<2x32xf32>
    %338 = arith.mulf %337, %290 : vector<2x32xf32>
    %339 = vector.extract_strided_slice %334 {offsets = [0, 0], sizes = [2, 32], strides = [1, 1]} : vector<2x128xf32> to vector<2x32xf32>
    %340 = arith.mulf %339, %336 : vector<2x32xf32>
    %341 = arith.addf %338, %340 : vector<2x32xf32>
    %342 = vector.extract_strided_slice %334 {offsets = [0, 96], sizes = [2, 32], strides = [1, 1]} : vector<2x128xf32> to vector<2x32xf32>
    %343 = math.tanh %341 : vector<2x32xf32>
    %344 = arith.mulf %342, %343 : vector<2x32xf32>
    %345 = arith.truncf %311 : vector<2x32xf32> to vector<2x32xbf16>
    %cst_97 = arith.constant dense<0.000000e+00> : vector<2x128xf32>
    %346 = tpu.matmul %345, %12, %cst_97 {dimension_numbers = #tpu.dot_dimension_numbers<[1], [0], [0], [1], [0, 0, 1, 1], [], []>} : vector<2x32xbf16>, vector<32x128xbf16>, vector<2x128xf32> -> vector<2x128xf32>
    %347 = arith.addf %326, %346 : vector<2x128xf32>
    %348 = arith.negf %347 : vector<2x128xf32>
    %349 = math.exp %348 : vector<2x128xf32>
    %cst_98 = arith.constant 1.000000e+00 : f32
    %350 = vector.broadcast %cst_98 : f32 to vector<2x128xf32>
    %351 = arith.addf %350, %349 : vector<2x128xf32>
    %352 = arith.divf %350, %351 : vector<2x128xf32>
    %353 = vector.extract_strided_slice %347 {offsets = [0, 64], sizes = [2, 32], strides = [1, 1]} : vector<2x128xf32> to vector<2x32xf32>
    %354 = math.tanh %353 : vector<2x32xf32>
    %355 = vector.extract_strided_slice %352 {offsets = [0, 32], sizes = [2, 32], strides = [1, 1]} : vector<2x128xf32> to vector<2x32xf32>
    %356 = arith.mulf %355, %308 : vector<2x32xf32>
    %357 = vector.extract_strided_slice %352 {offsets = [0, 0], sizes = [2, 32], strides = [1, 1]} : vector<2x128xf32> to vector<2x32xf32>
    %358 = arith.mulf %357, %354 : vector<2x32xf32>
    %359 = arith.addf %356, %358 : vector<2x32xf32>
    %360 = vector.extract_strided_slice %352 {offsets = [0, 96], sizes = [2, 32], strides = [1, 1]} : vector<2x128xf32> to vector<2x32xf32>
    %361 = math.tanh %359 : vector<2x32xf32>
    %362 = arith.mulf %360, %361 : vector<2x32xf32>
    %c2_i32_99 = arith.constant 2 : i32
    %363 = arith.muli %c6_i32, %c2_i32_99 : i32
    %364 = arith.index_cast %363 : i32 to index
    %c0_100 = arith.constant 0 : index
    %365 = vector.load %arg17[%364, %c0_100] : memref<16x64xf32, #tpu.memory_space<vmem>>, vector<2x32xf32>
    tpu.vector_store %arg17[%364, %c0_100], %344 {strides = array<i32>} : memref<16x64xf32, #tpu.memory_space<vmem>>, vector<2x32xf32>,
    %c2_i32_101 = arith.constant 2 : i32
    %366 = arith.muli %320, %c2_i32_101 : i32
    %367 = arith.index_cast %366 : i32 to index
    %c32_102 = arith.constant 32 : index
    %368 = vector.load %arg17[%367, %c32_102] : memref<16x64xf32, #tpu.memory_space<vmem>>, vector<2x32xf32>
    tpu.vector_store %arg17[%367, %c32_102], %362 {strides = array<i32>} : memref<16x64xf32, #tpu.memory_space<vmem>>, vector<2x32xf32>,
    %369 = arith.addf %318, %344 : vector<2x32xf32>
    %370 = arith.addf %319, %362 : vector<2x32xf32>
    %c7_i32_103 = arith.constant 7 : i32
    %c7_i32_104 = arith.constant 7 : i32
    %371 = arith.subi %c7_i32_104, %c7_i32_103 : i32
    %c2_i32_105 = arith.constant 2 : i32
    %372 = arith.muli %c7_i32_103, %c2_i32_105 : i32
    %373 = arith.index_cast %372 : i32 to index
    %c0_106 = arith.constant 0 : index
    %374 = vector.load %arg15[%373, %c0_106] : memref<16x128xf32, #tpu.memory_space<vmem>>, vector<2x128xf32>
    %c2_i32_107 = arith.constant 2 : i32
    %375 = arith.muli %371, %c2_i32_107 : i32
    %376 = arith.index_cast %375 : i32 to index
    %c0_108 = arith.constant 0 : index
    %377 = vector.load %arg16[%376, %c0_108] : memref<16x128xf32, #tpu.memory_space<vmem>>, vector<2x128xf32>
    %378 = arith.truncf %344 : vector<2x32xf32> to vector<2x32xbf16>
    %cst_109 = arith.constant dense<0.000000e+00> : vector<2x128xf32>
    %379 = tpu.matmul %378, %11, %cst_109 {dimension_numbers = #tpu.dot_dimension_numbers<[1], [0], [0], [1], [0, 0, 1, 1], [], []>} : vector<2x32xbf16>, vector<32x128xbf16>, vector<2x128xf32> -> vector<2x128xf32>
    %380 = arith.addf %374, %379 : vector<2x128xf32>
    %381 = arith.negf %380 : vector<2x128xf32>
    %382 = math.exp %381 : vector<2x128xf32>
    %cst_110 = arith.constant 1.000000e+00 : f32
    %383 = vector.broadcast %cst_110 : f32 to vector<2x128xf32>
    %384 = arith.addf %383, %382 : vector<2x128xf32>
    %385 = arith.divf %383, %384 : vector<2x128xf32>
    %386 = vector.extract_strided_slice %380 {offsets = [0, 64], sizes = [2, 32], strides = [1, 1]} : vector<2x128xf32> to vector<2x32xf32>
    %387 = math.tanh %386 : vector<2x32xf32>
    %388 = vector.extract_strided_slice %385 {offsets = [0, 32], sizes = [2, 32], strides = [1, 1]} : vector<2x128xf32> to vector<2x32xf32>
    %389 = arith.mulf %388, %341 : vector<2x32xf32>
    %390 = vector.extract_strided_slice %385 {offsets = [0, 0], sizes = [2, 32], strides = [1, 1]} : vector<2x128xf32> to vector<2x32xf32>
    %391 = arith.mulf %390, %387 : vector<2x32xf32>
    %392 = arith.addf %389, %391 : vector<2x32xf32>
    %393 = vector.extract_strided_slice %385 {offsets = [0, 96], sizes = [2, 32], strides = [1, 1]} : vector<2x128xf32> to vector<2x32xf32>
    %394 = math.tanh %392 : vector<2x32xf32>
    %395 = arith.mulf %393, %394 : vector<2x32xf32>
    %396 = arith.truncf %362 : vector<2x32xf32> to vector<2x32xbf16>
    %cst_111 = arith.constant dense<0.000000e+00> : vector<2x128xf32>
    %397 = tpu.matmul %396, %12, %cst_111 {dimension_numbers = #tpu.dot_dimension_numbers<[1], [0], [0], [1], [0, 0, 1, 1], [], []>} : vector<2x32xbf16>, vector<32x128xbf16>, vector<2x128xf32> -> vector<2x128xf32>
    %398 = arith.addf %377, %397 : vector<2x128xf32>
    %399 = arith.negf %398 : vector<2x128xf32>
    %400 = math.exp %399 : vector<2x128xf32>
    %cst_112 = arith.constant 1.000000e+00 : f32
    %401 = vector.broadcast %cst_112 : f32 to vector<2x128xf32>
    %402 = arith.addf %401, %400 : vector<2x128xf32>
    %403 = arith.divf %401, %402 : vector<2x128xf32>
    %404 = vector.extract_strided_slice %398 {offsets = [0, 64], sizes = [2, 32], strides = [1, 1]} : vector<2x128xf32> to vector<2x32xf32>
    %405 = math.tanh %404 : vector<2x32xf32>
    %406 = vector.extract_strided_slice %403 {offsets = [0, 32], sizes = [2, 32], strides = [1, 1]} : vector<2x128xf32> to vector<2x32xf32>
    %407 = arith.mulf %406, %359 : vector<2x32xf32>
    %408 = vector.extract_strided_slice %403 {offsets = [0, 0], sizes = [2, 32], strides = [1, 1]} : vector<2x128xf32> to vector<2x32xf32>
    %409 = arith.mulf %408, %405 : vector<2x32xf32>
    %410 = arith.addf %407, %409 : vector<2x32xf32>
    %411 = vector.extract_strided_slice %403 {offsets = [0, 96], sizes = [2, 32], strides = [1, 1]} : vector<2x128xf32> to vector<2x32xf32>
    %412 = math.tanh %410 : vector<2x32xf32>
    %413 = arith.mulf %411, %412 : vector<2x32xf32>
    %c2_i32_113 = arith.constant 2 : i32
    %414 = arith.muli %c7_i32_103, %c2_i32_113 : i32
    %415 = arith.index_cast %414 : i32 to index
    %c0_114 = arith.constant 0 : index
    %416 = vector.load %arg17[%415, %c0_114] : memref<16x64xf32, #tpu.memory_space<vmem>>, vector<2x32xf32>
    tpu.vector_store %arg17[%415, %c0_114], %395 {strides = array<i32>} : memref<16x64xf32, #tpu.memory_space<vmem>>, vector<2x32xf32>,
    %c2_i32_115 = arith.constant 2 : i32
    %417 = arith.muli %371, %c2_i32_115 : i32
    %418 = arith.index_cast %417 : i32 to index
    %c32_116 = arith.constant 32 : index
    %419 = vector.load %arg17[%418, %c32_116] : memref<16x64xf32, #tpu.memory_space<vmem>>, vector<2x32xf32>
    tpu.vector_store %arg17[%418, %c32_116], %413 {strides = array<i32>} : memref<16x64xf32, #tpu.memory_space<vmem>>, vector<2x32xf32>,
    %420 = arith.addf %369, %395 : vector<2x32xf32>
    %421 = arith.addf %370, %413 : vector<2x32xf32>
    %c8_i32 = arith.constant 8 : i32
    %c0_117 = arith.constant 0 : index
    %c0_118 = arith.constant 0 : index
    %422 = vector.load %arg17[%c0_117, %c0_118] : memref<16x64xf32, #tpu.memory_space<vmem>>, vector<16x64xf32>
    %423 = arith.truncf %422 : vector<16x64xf32> to vector<16x64xbf16>
    %c0_119 = arith.constant 0 : index
    %c0_120 = arith.constant 0 : index
    %424 = vector.load %arg5[%c0_119, %c0_120] : memref<64x512xbf16, #tpu.memory_space<vmem>>, vector<64x512xbf16>
    %cst_121 = arith.constant dense<0.000000e+00> : vector<16x512xf32>
    %425 = tpu.matmul %423, %424, %cst_121 {dimension_numbers = #tpu.dot_dimension_numbers<[1], [0], [0], [1], [0, 0, 1, 1], [], []>} : vector<16x64xbf16>, vector<64x512xbf16>, vector<16x512xf32> -> vector<16x512xf32>
    %c0_122 = arith.constant 0 : index
    %c0_123 = arith.constant 0 : index
    %426 = vector.load %arg6[%c0_122, %c0_123] : memref<1x512xf32, #tpu.memory_space<vmem>>, vector<1x512xf32>
    %427 = vector.broadcast %426 : vector<1x512xf32> to vector<16x512xf32>
    %428 = arith.addf %425, %427 : vector<16x512xf32>
    %cst_124 = arith.constant 0.000000e+00 : f32
    %429 = vector.broadcast %cst_124 : f32 to vector<16x512xf32>
    %430 = arith.maximumf %428, %429 : vector<16x512xf32>
    %431 = arith.truncf %430 : vector<16x512xf32> to vector<16x512xbf16>
    %c0_125 = arith.constant 0 : index
    %c0_126 = arith.constant 0 : index
    %432 = vector.load %arg7[%c0_125, %c0_126] : memref<512x8xbf16, #tpu.memory_space<vmem>>, vector<512x8xbf16>
    %cst_127 = arith.constant dense<0.000000e+00> : vector<16x8xf32>
    %433 = tpu.matmul %431, %432, %cst_127 {dimension_numbers = #tpu.dot_dimension_numbers<[1], [0], [0], [1], [0, 0, 1, 1], [], []>} : vector<16x512xbf16>, vector<512x8xbf16>, vector<16x8xf32> -> vector<16x8xf32>
    %c0_128 = arith.constant 0 : index
    %c0_129 = arith.constant 0 : index
    %434 = vector.load %arg8[%c0_128, %c0_129] : memref<1x8xf32, #tpu.memory_space<vmem>>, vector<1x8xf32>
    %435 = vector.broadcast %434 : vector<1x8xf32> to vector<16x8xf32>
    %436 = arith.addf %433, %435 : vector<16x8xf32>
    %c0_130 = arith.constant 0 : index
    %c0_131 = arith.constant 0 : index
    %437 = vector.load %arg13[%c0_130, %c0_131] : memref<16x8xf32, #tpu.memory_space<vmem>>, vector<16x8xf32>
    tpu.vector_store %arg13[%c0_130, %c0_131], %436 {strides = array<i32>} : memref<16x8xf32, #tpu.memory_space<vmem>>, vector<16x8xf32>,
    %438 = tpu.concatenate %420, %421 in 1 : vector<2x32xf32>, vector<2x32xf32> -> vector<2x64xf32>
    %cst_132 = arith.constant 1.250000e-01 : f32
    %439 = vector.broadcast %cst_132 : f32 to vector<2x64xf32>
    %440 = arith.mulf %438, %439 : vector<2x64xf32>
    %441 = arith.truncf %440 : vector<2x64xf32> to vector<2x64xbf16>
    %c0_133 = arith.constant 0 : index
    %c0_134 = arith.constant 0 : index
    %442 = vector.load %arg9[%c0_133, %c0_134] : memref<64x512xbf16, #tpu.memory_space<vmem>>, vector<64x512xbf16>
    %cst_135 = arith.constant dense<0.000000e+00> : vector<2x512xf32>
    %443 = tpu.matmul %441, %442, %cst_135 {dimension_numbers = #tpu.dot_dimension_numbers<[1], [0], [0], [1], [0, 0, 1, 1], [], []>} : vector<2x64xbf16>, vector<64x512xbf16>, vector<2x512xf32> -> vector<2x512xf32>
    %c0_136 = arith.constant 0 : index
    %c0_137 = arith.constant 0 : index
    %444 = vector.load %arg10[%c0_136, %c0_137] : memref<1x512xf32, #tpu.memory_space<vmem>>, vector<1x512xf32>
    %445 = vector.broadcast %444 : vector<1x512xf32> to vector<2x512xf32>
    %446 = arith.addf %443, %445 : vector<2x512xf32>
    %cst_138 = arith.constant 0.000000e+00 : f32
    %447 = vector.broadcast %cst_138 : f32 to vector<2x512xf32>
    %448 = arith.maximumf %446, %447 : vector<2x512xf32>
    %449 = arith.truncf %448 : vector<2x512xf32> to vector<2x512xbf16>
    %c0_139 = arith.constant 0 : index
    %c0_140 = arith.constant 0 : index
    %450 = vector.load %arg11[%c0_139, %c0_140] : memref<512x9xbf16, #tpu.memory_space<vmem>>, vector<512x9xbf16>
    %cst_141 = arith.constant dense<0.000000e+00> : vector<2x9xf32>
    %451 = tpu.matmul %449, %450, %cst_141 {dimension_numbers = #tpu.dot_dimension_numbers<[1], [0], [0], [1], [0, 0, 1, 1], [], []>} : vector<2x512xbf16>, vector<512x9xbf16>, vector<2x9xf32> -> vector<2x9xf32>
    %c0_142 = arith.constant 0 : index
    %c0_143 = arith.constant 0 : index
    %452 = vector.load %arg12[%c0_142, %c0_143] : memref<1x9xf32, #tpu.memory_space<vmem>>, vector<1x9xf32>
    %453 = vector.broadcast %452 : vector<1x9xf32> to vector<2x9xf32>
    %454 = arith.addf %451, %453 : vector<2x9xf32>
    %c0_144 = arith.constant 0 : index
    %c0_145 = arith.constant 0 : index
    %455 = vector.load %arg14[%c0_144, %c0_145] : memref<2x9xf32, #tpu.memory_space<vmem>>, vector<2x9xf32>
    tpu.vector_store %arg14[%c0_144, %c0_145], %454 {strides = array<i32>} : memref<2x9xf32, #tpu.memory_space<vmem>>, vector<2x9xf32>,
    return
  }
}

</mosaic_0001>

<bundles_post_ra>
// kernel: forward.1
= control target key start
LH: loop header
LB: loop body
LE: loop exit
PB: predicated region body
PF: predicated region fallthrough
CT: control target
= control target key end

     0   :  { %vm85_vm0 = vcmask 1041408   ;;  %v3272_v3 = vmov 0   ;;  %v3273_v7 = vmov 0.0   ;;  %vm3274_vm1 = vmmov 0   ;;  %s4113_s0 = inlined_call_operand.vmem [shape: f32[16,20], index: 0, kind: input, shape index: {}]   ;;  %s4114_s1 = inlined_call_operand.vmem [shape: bf16[20,256], index: 1, kind: input, shape index: {}]   ;;  %s4115_s2 = inlined_call_operand.vmem [shape: f32[1,256], index: 2, kind: input, shape index: {}]   ;;  %s4116_s3 = inlined_call_operand.vmem [shape: bf16[32,128], index: 3, kind: input, shape index: {}]   ;;  %s4117_s4 = inlined_call_operand.vmem [shape: bf16[32,128], index: 4, kind: input, shape index: {}]   ;;  %s4118_s5 = inlined_call_operand.vmem [shape: bf16[64,512], index: 5, kind: input, shape index: {}]   ;;  %s4119_s6 = inlined_call_operand.vmem [shape: f32[1,512], index: 6, kind: input, shape index: {}]   ;;  %s4120_s7 = inlined_call_operand.vmem [shape: bf16[512,8], index: 7, kind: input, shape index: {}]   ;;  %s4121_s8 = inlined_call_operand.vmem [shape: f32[1,8], index: 8, kind: input, shape index: {}]   ;;  %s4122_s9 = inlined_call_operand.vmem [shape: bf16[64,512], index: 9, kind: input, shape index: {}]   ;;  %s4123_s10 = inlined_call_operand.vmem [shape: f32[1,512], index: 10, kind: input, shape index: {}]   ;;  %s4124_s11 = inlined_call_operand.vmem [shape: bf16[512,9], index: 11, kind: input, shape index: {}]   ;;  %s4125_s12 = inlined_call_operand.vmem [shape: f32[1,9], index: 12, kind: input, shape index: {}]   ;;  %s4126_s13 = inlined_call_operand.vmem [shape: f32[16,8], index: 13, kind: output, shape index: {0}]   ;;  %s4127_s14 = inlined_call_operand.hbm [shape: f32[2,9], index: 14, kind: output, shape index: {1}]  }
   0x1   :  { %v2995_v0 = vld [vmem:[%s4114_s1 + $0x4] ss:$8 sps:$4 sm:$0xff]   ;;  %v2997_v1 = vld [vmem:[%s4114_s1] ss:$8 sps:$4 sm:$0xff]   ;;  %v53_v2 = vld [vmem:[%s4114_s1 + $0x10] sm:$0x33]  ;;  %124 = vmatprep.mubr.bf16.mxu0 %v3272_v3  ;;  %2861 = vmatprep.subr.bf16.mxu1 %v3273_v7 }
   0x2   :  { %v48_v4 = vld [vmem:[%s4113_s0] sm:$0xff]  ;;  %92 = vmatprep.subr.bf16.mxu0 %v2995_v0  ;;  %v2586_v5 = vcombine.high %v53_v2, %v53_v2  ;;  %v2585_v6 = vcombine.low %v53_v2, %v53_v2  ;;  %v49_v8 = vld [vmem:[%s4113_s0 + $0x8] sm:$0xff]  ;;  %2865 = vmatprep.mubr.msk.bf16.mxu1 %vm3274_vm1, %v3273_v7  ;;  %vm81_vm2 = vcmask 162816  }
   0x3   :  { %93 = vmatpush1.bf16.msra.mxu0 %v2997_v1  ;;  %v3373_v9 = vld [vmem:[%s4116_s3] sm:$0xff]   ;;  %v3381_v11 = vld [vmem:[%s4116_s3 + $0x8] sm:$0xff]   ;;  %v50_v12 = vpack.c.bf16 %v49_v8, %v48_v4 }
   0x4   :  { %2587 = vmatprep.subr.msk.bf16.mxu0 %vm85_vm0, %v2586_v5  ;;  %v87_v10 = vsel %vm85_vm0, %v2585_v6, 0  ;;  %2862 = vmatpush3.bf16.msra.mxu1 %v3373_v9  ;;  %v3387_v13 = vld [vmem:[%s4117_s4] sm:$0xff]   ;;  %v3394_v14 = vld [vmem:[%s4117_s4 + $0x8] sm:$0xff]  }
   0x5   :  { %2863 = vmatprep.subr.bf16.mxu1 %v3273_v7 }
   0x7   :  { %95 = vmatpush1.bf16.msra.mxu0 %v87_v10 }
   0x8   :  { %2869 = vmatprep.subr.bf16.mxu0 %v3273_v7  ;;  %2864 = vmatpush3.bf16.msra.mxu1 %v3381_v11 }
   0x9   :  { %2877 = vmatprep.subr.bf16.mxu1 %v3273_v7 }
   0xa   :  { %2588 = vmatmul.mubr.msk.bf16.vlgmr.msra.gmra.mrb[0].mxu0 %vm81_vm2, %v50_v12 }
   0xb   :  { %2870 = vmatpush3.bf16.msra.mxu0 %v3387_v13  ;;  %2873 = vmatprep.mubr.msk.bf16.mxu0 %vm3274_vm1, %v3273_v7 }
   0xc   :  { %2866 = vmatmul.mubr.bf16.vlgmr.msra.gmra.mrb[0].mxu1 %v3272_v3  ;;  %2871 = vmatprep.subr.bf16.mxu0 %v3273_v7 }
   0xd   :  { %2878 = vmatpush3.bf16.msra.mxu1 %v3373_v9  ;;  %2881 = vmatprep.mubr.msk.bf16.mxu1 %vm3274_vm1, %v3273_v7 }
   0xe   :  { %2879 = vmatprep.subr.bf16.mxu1 %v3273_v7 }
   0xf   :  { %2872 = vmatpush3.bf16.msra.mxu0 %v3394_v14 }
  0x10   :  { %2885 = vmatprep.subr.bf16.mxu0 %v3273_v7 }
  0x11   :  { %2880 = vmatpush3.bf16.msra.mxu1 %v3381_v11 }
  0x12   :  { %2874 = vmatmul.mubr.bf16.vlgmr.msra.gmra.mrb[4].mxu0 %v3272_v3  ;;  %2893 = vmatprep.subr.bf16.mxu1 %v3273_v7 }
  0x13   :  { %2886 = vmatpush3.bf16.msra.mxu0 %v3387_v13  ;;  %2889 = vmatprep.mubr.msk.bf16.mxu0 %vm3274_vm1, %v3273_v7 }
  0x14   :  { %2887 = vmatprep.subr.bf16.mxu0 %v3273_v7 }
  0x17   :  { %2888 = vmatpush3.bf16.msra.mxu0 %v3394_v14 }
  0x18   :  { %2901 = vmatprep.subr.bf16.mxu0 %v3273_v7 }
  0x19   :  { %20 = vsyncpa [#allocation6], 0  ;;  %v56_v15 = vlaneseq  ;;  %v54_v18 = vld [vmem:[%s4115_s2] sm:$0x3]  ;;  %s3275_s2 = smov 64   ;;  %s3276_s15 = smov 32  }
  0x1a   :  { %vm161_vm3 = vcmask 261120   ;;  %vm311_vm4 = vcmask 254976   ;;  %vm317_vm5 = vcmask 517376   ;;  %vm1548_vm6 = vcmask 523264   ;;  %s3277_s21 = smov [#allocation5]  }
  0x1b   :  { %v3417_v16 = vshrl.u32 %v56_v15, 7  ;;  %vm1995_vm7 = vcmask 64512   ;;  %vm2563_vm8 = vcmask 66560  }
  0x1d   :  { %v3420_v17 = vsub.s32 0, %v3417_v16  ;;  %v3426_v19 = vsub.s32 1, %v3417_v16 }
  0x1f   :  { %v59_v20 = vrot.slane %v54_v18, %v3420_v17  ;;  %v63_v21 = vrot.slane %v54_v18, %v3426_v19 }
  0xdd   :  { %v126_v22 = vpop.f32.mrb[0].mxu0 }
  0xde   :  { %v127_v23 = vadd.f32 %v126_v22, %v59_v20  ;;  %v128_v24 = vpop.f32.mrb[1].mxu0 }
  0xdf   :  { %v129_v25 = vadd.f32 %v128_v24, %v63_v21  ;;  %v130_v26 = vpop.f32.mrb[2].mxu0  ;;  %v199_v27 = vpop.f32.mrb[0].mxu1 }
  0xe0   :  { %135 = vst [vmem:[#allocation2] sm:$0xff] %v127_v23  ;;  %v131_v28 = vadd.f32 %v130_v26, %v59_v20  ;;  %v132_v29 = vpop.f32.mrb[3].mxu0  ;;  %v2867_v30 = vpop.f32.mrb[1].mxu1 }
  0xe1   :  { %137 = vst [vmem:[#allocation3] sm:$0xff] %v129_v25  ;;  %v133_v31 = vadd.f32 %v132_v29, %v63_v21  ;;  %v202_v32 = vpop.f32.mrb[2].mxu1 }
  0xe2   :  { %136 = vst [vmem:[#allocation2 + $0x8] sm:$0xff] %v131_v28  ;;  %v2868_v33 = vpop.f32.mrb[3].mxu1 }
  0xe3   :  { %138 = vst [vmem:[#allocation3 + $0x8] sm:$0xff] %v133_v31 }
  0xe5   :  { %v276_v34 = vpop.f32.mrb[4].mxu0 }
  0xe6   :  { %v2875_v35 = vpop.f32.mrb[5].mxu0 }
  0xe7   :  { %v147_v36 = vld [vmem:[#allocation2] sm:$0x3]  ;;  %v279_v37 = vpop.f32.mrb[6].mxu0  ;;  %v321_v12 = vld [vmem:[#allocation2 + $0x2] sm:$0x3] }
  0xe8   :  { %v205_v38 = vadd.f32 %v199_v27, %v147_v36  ;;  %v2876_v39 = vpop.f32.mrb[7].mxu0 }
  0xea   :  { %3116 = vtanh.f32 %v205_v38  ;;  %v148_v40 = vld [vmem:[#allocation3 + $0xe] sm:$0x3]  ;;  %v2591_v44 = vmul.f32 -1.442695, %v205_v38  ;;  %v322_v23 = vld [vmem:[#allocation3 + $0xc] sm:$0x3] }
  0xeb   :  { %v282_v41 = vadd.f32 %v276_v34, %v148_v40 }
  0xed   :  { %3118 = vtanh.f32 %v282_v41  ;;  %v2594_v45 = vmul.f32 -1.442695, %v282_v41 }
  0xee   :  { %3120 = vpow2.f32 %v2591_v44 }
  0xef   :  { %3122 = vpow2.f32 %v2594_v45 }
  0xf4   :  { %v3117_v42 = vpop.eup %3116 }
  0xf5   :  { %215 = vrot.lane.b32.xlu0 %v3117_v42, %s3275_s2 }
  0xf7   :  { %v3119_v43 = vpop.eup %3118 }
  0xf8   :  { %v3121_v46 = vpop.eup %3120 }
  0xf9   :  { %292 = vrot.lane.b32.xlu0 %v3119_v43, %s3275_s2  ;;  %v209_v47 = vadd.f32 1.0, %v3121_v46  ;;  %v3123_v48 = vpop.eup %3122 }
  0xfa   :  { %v286_v49 = vadd.f32 1.0, %v3123_v48 }
  0xfb   :  { %3124 = vrcp.f32 %v209_v47 }
  0xfc   :  { %3126 = vrcp.f32 %v286_v49 }
 0x105   :  { %v3125_v50 = vpop.eup %3124 }
 0x106   :  { %v3127_v53 = vpop.eup %3126  ;;  %v213_v56 = vmul.f32 0.0, %v3125_v50 }
 0x107   :  { %v290_v59 = vmul.f32 0.0, %v3127_v53 }
 0x167   :  { %v216_v51 = vpop.permute.xlu0 %215 }
 0x168   :  { %v218_v52 = vmul.f32 %v3125_v50, %v216_v51 }
 0x16a   :  { %220 = vrot.lane.b32.xlu1 %v218_v52, %s3276_s15 }
 0x16b   :  { %v293_v54 = vpop.permute.xlu0 %292 }
 0x16c   :  { %v295_v55 = vmul.f32 %v3127_v53, %v293_v54 }
 0x16e   :  { %297 = vrot.lane.b32.xlu1 %v295_v55, %s3276_s15 }
 0x1dc   :  { %v221_v57 = vpop.permute.xlu1 %220 }
 0x1dd   :  { %v3434_v58 = vadd.f32 %v221_v57, %v213_v56 }
 0x1df   :  { %3128 = vtanh.f32 %v3434_v58 }
 0x1e0   :  { %v298_v60 = vpop.permute.xlu1 %297 }
 0x1e1   :  { %v3437_v61 = vadd.f32 %v298_v60, %v290_v59  ;;  %v479_v59 = vld [vmem:[#allocation2 + $0x4] sm:$0x3] }
 0x1e3   :  { %3130 = vtanh.f32 %v3437_v61 }
 0x1e9   :  { %v3129_v62 = vpop.eup %3128 }
 0x1ea   :  { %226 = vrot.lane.b32.xlu0 %v3129_v62, %s3275_s2 }
 0x1ed   :  { %v3131_v63 = vpop.eup %3130 }
 0x1ee   :  { %303 = vrot.lane.b32.xlu1 %v3131_v63, %s3275_s2 }
 0x25c   :  { %v227_v0 = vpop.permute.xlu0 %226 }
 0x25d   :  { %v3442_v1 = vmul.f32 %v3125_v50, %v227_v0 }
 0x25f   :  { %v323_v2 = vpack.c.bf16 %v3442_v1, %v3442_v1 }
 0x260   :  { %v304_v4 = vpop.permute.xlu1 %303 }
 0x261   :  { %v3446_v5 = vmul.f32 %v3127_v53, %v304_v4  ;;  %325 = vrot.lane.b32.xlu0 %v323_v2, %s3276_s15  ;;  %v480_v2 = vld [vmem:[#allocation3 + $0xa] sm:$0x3] }
 0x263   :  { %v395_v6 = vpack.c.bf16 %v3446_v5, %v3446_v5 }
 0x265   :  { %397 = vrot.lane.b32.xlu1 %v395_v6, %s3276_s15 }
 0x2d3   :  { %v326_v8 = vpop.permute.xlu0 %325 }
 0x2d4   :  { %2882 = vmatmul.mubr.msk.bf16.vlgmr.msra.gmra.mrb[4].mxu1 %vm161_vm3, %v326_v8 }
 0x2d5   :  { %2894 = vmatpush3.bf16.msra.mxu1 %v3373_v9  ;;  %2897 = vmatprep.mubr.msk.bf16.mxu1 %vm3274_vm1, %v3273_v7 }
 0x2d6   :  { %2895 = vmatprep.subr.bf16.mxu1 %v3273_v7 }
 0x2d7   :  { %v398_v10 = vpop.permute.xlu1 %397 }
 0x2d8   :  { %2890 = vmatmul.mubr.msk.bf16.vlgmr.msra.gmra.mrb[8].mxu0 %vm161_vm3, %v398_v10 }
 0x2d9   :  { %2902 = vmatpush3.bf16.msra.mxu0 %v3387_v13  ;;  %2896 = vmatpush3.bf16.msra.mxu1 %v3381_v11 }
 0x2da   :  { %2903 = vmatprep.subr.bf16.mxu0 %v3273_v7  ;;  %2905 = vmatprep.mubr.msk.bf16.mxu0 %vm3274_vm1, %v3273_v7 }
 0x2db   :  { %2909 = vmatprep.subr.bf16.mxu1 %v3273_v7 }
 0x2dd   :  { %2904 = vmatpush3.bf16.msra.mxu0 %v3394_v14 }
 0x2de   :  { %2917 = vmatprep.subr.bf16.mxu0 %v3273_v7 }
 0x3a7   :  { %v364_v15 = vpop.f32.mrb[4].mxu1 }
 0x3a8   :  { %v370_v18 = vadd.f32 %v364_v15, %v321_v12  ;;  %v2883_v20 = vpop.f32.mrb[5].mxu1 }
 0x3a9   :  { %v367_v21 = vpop.f32.mrb[6].mxu1 }
 0x3aa   :  { %3132 = vtanh.f32 %v370_v18  ;;  %v2884_v22 = vpop.f32.mrb[7].mxu1  ;;  %v2596_v31 = vmul.f32 -1.442695, %v370_v18 }
 0x3ab   :  { %v436_v24 = vpop.f32.mrb[8].mxu0 }
 0x3ac   :  { %v442_v25 = vadd.f32 %v436_v24, %v322_v23  ;;  %v2891_v26 = vpop.f32.mrb[9].mxu0 }
 0x3ad   :  { %v439_v27 = vpop.f32.mrb[10].mxu0 }
 0x3ae   :  { %3134 = vtanh.f32 %v442_v25  ;;  %v2892_v28 = vpop.f32.mrb[11].mxu0  ;;  %v2598_v32 = vmul.f32 -1.442695, %v442_v25 }
 0x3af   :  { %3136 = vpow2.f32 %v2596_v31 }
 0x3b0   :  { %3138 = vpow2.f32 %v2598_v32 }
 0x3b4   :  { %v3133_v29 = vpop.eup %3132 }
 0x3b5   :  { %380 = vrot.lane.b32.xlu0 %v3133_v29, %s3275_s2 }
 0x3b8   :  { %v3135_v30 = vpop.eup %3134 }
 0x3b9   :  { %452 = vrot.lane.b32.xlu1 %v3135_v30, %s3275_s2  ;;  %v3137_v33 = vpop.eup %3136 }
 0x3ba   :  { %v374_v34 = vadd.f32 1.0, %v3137_v33  ;;  %v3139_v35 = vpop.eup %3138 }
 0x3bb   :  { %v446_v36 = vadd.f32 1.0, %v3139_v35 }
 0x3bc   :  { %3140 = vrcp.f32 %v374_v34 }
 0x3bd   :  { %3142 = vrcp.f32 %v446_v36 }
 0x3c6   :  { %v3141_v37 = vpop.eup %3140 }
 0x3c7   :  { %v3143_v40 = vpop.eup %3142  ;;  %v378_v43 = vmul.f32 %v3141_v37, %v3434_v58 }
 0x3c8   :  { %v450_v46 = vmul.f32 %v3143_v40, %v3437_v61 }
 0x427   :  { %v381_v38 = vpop.permute.xlu0 %380 }
 0x428   :  { %v383_v39 = vmul.f32 %v3141_v37, %v381_v38 }
 0x42a   :  { %385 = vrot.lane.b32.xlu0 %v383_v39, %s3276_s15 }
 0x42b   :  { %v453_v41 = vpop.permute.xlu1 %452 }
 0x42c   :  { %v455_v42 = vmul.f32 %v3143_v40, %v453_v41 }
 0x42e   :  { %457 = vrot.lane.b32.xlu1 %v455_v42, %s3276_s15 }
 0x49c   :  { %v386_v44 = vpop.permute.xlu0 %385 }
 0x49d   :  { %v3471_v45 = vadd.f32 %v386_v44, %v378_v43 }
 0x49f   :  { %3144 = vtanh.f32 %v3471_v45 }
 0x4a0   :  { %v458_v47 = vpop.permute.xlu1 %457 }
 0x4a1   :  { %v3475_v48 = vadd.f32 %v458_v47, %v450_v46 }
 0x4a3   :  { %3146 = vtanh.f32 %v3475_v48 }
 0x4a9   :  { %v3145_v49 = vpop.eup %3144 }
 0x4aa   :  { %391 = vrot.lane.b32.xlu0 %v3145_v49, %s3275_s2 }
 0x4ad   :  { %v3147_v50 = vpop.eup %3146 }
 0x4ae   :  { %463 = vrot.lane.b32.xlu1 %v3147_v50, %s3275_s2 }
 0x51c   :  { %v392_v51 = vpop.permute.xlu0 %391 }
 0x51d   :  { %v3480_v52 = vmul.f32 %v3141_v37, %v392_v51 }
 0x51f   :  { %v481_v53 = vpack.c.bf16 %v3480_v52, %v3480_v52 }
 0x520   :  { %v464_v54 = vpop.permute.xlu1 %463 }
 0x521   :  { %v3484_v55 = vmul.f32 %v3143_v40, %v464_v54  ;;  %483 = vrot.lane.b32.xlu0 %v481_v53, %s3276_s15 }
 0x523   :  { %v553_v56 = vpack.c.bf16 %v3484_v55, %v3484_v55 }
 0x525   :  { %555 = vrot.lane.b32.xlu1 %v553_v56, %s3276_s15  ;;  %v638_v56 = vld [vmem:[#allocation3 + $0x8] sm:$0x3] }
 0x593   :  { %v484_v57 = vpop.permute.xlu0 %483 }
 0x594   :  { %2898 = vmatmul.mubr.msk.bf16.vlgmr.msra.gmra.mrb[8].mxu1 %vm161_vm3, %v484_v57 }
 0x595   :  { %2910 = vmatpush3.bf16.msra.mxu1 %v3373_v9  ;;  %2913 = vmatprep.mubr.msk.bf16.mxu1 %vm3274_vm1, %v3273_v7 }
 0x596   :  { %2911 = vmatprep.subr.bf16.mxu1 %v3273_v7 }
 0x597   :  { %v556_v58 = vpop.permute.xlu1 %555 }
 0x598   :  { %2906 = vmatmul.mubr.msk.bf16.vlgmr.msra.gmra.mrb[12].mxu0 %vm161_vm3, %v556_v58 }
 0x599   :  { %2918 = vmatpush3.bf16.msra.mxu0 %v3387_v13  ;;  %2912 = vmatpush3.bf16.msra.mxu1 %v3381_v11 }
 0x59a   :  { %2919 = vmatprep.subr.bf16.mxu0 %v3273_v7  ;;  %2921 = vmatprep.mubr.msk.bf16.mxu0 %vm3274_vm1, %v3273_v7 }
 0x59b   :  { %2925 = vmatprep.subr.bf16.mxu1 %v3273_v7 }
 0x59d   :  { %2920 = vmatpush3.bf16.msra.mxu0 %v3394_v14 }
 0x59e   :  { %2933 = vmatprep.subr.bf16.mxu0 %v3273_v7 }
 0x667   :  { %v522_v60 = vpop.f32.mrb[8].mxu1 }
 0x668   :  { %v528_v61 = vadd.f32 %v522_v60, %v479_v59  ;;  %v2899_v62 = vpop.f32.mrb[9].mxu1 }
 0x669   :  { %v525_v63 = vpop.f32.mrb[10].mxu1 }
 0x66a   :  { %3148 = vtanh.f32 %v528_v61  ;;  %v2900_v0 = vpop.f32.mrb[11].mxu1  ;;  %v2600_v20 = vmul.f32 -1.442695, %v528_v61 }
 0x66b   :  { %v594_v4 = vpop.f32.mrb[12].mxu0 }
 0x66c   :  { %v600_v6 = vadd.f32 %v594_v4, %v480_v2  ;;  %v2907_v8 = vpop.f32.mrb[13].mxu0 }
 0x66d   :  { %v597_v10 = vpop.f32.mrb[14].mxu0 }
 0x66e   :  { %3150 = vtanh.f32 %v600_v6  ;;  %v2908_v12 = vpop.f32.mrb[15].mxu0  ;;  %v2602_v21 = vmul.f32 -1.442695, %v600_v6 }
 0x66f   :  { %3152 = vpow2.f32 %v2600_v20 }
 0x670   :  { %3154 = vpow2.f32 %v2602_v21 }
 0x674   :  { %v3149_v15 = vpop.eup %3148 }
 0x675   :  { %538 = vrot.lane.b32.xlu0 %v3149_v15, %s3275_s2 }
 0x678   :  { %v3151_v18 = vpop.eup %3150 }
 0x679   :  { %610 = vrot.lane.b32.xlu1 %v3151_v18, %s3275_s2  ;;  %v3153_v22 = vpop.eup %3152 }
 0x67a   :  { %v532_v23 = vadd.f32 1.0, %v3153_v22  ;;  %v3155_v24 = vpop.eup %3154 }
 0x67b   :  { %v604_v25 = vadd.f32 1.0, %v3155_v24 }
 0x67c   :  { %3156 = vrcp.f32 %v532_v23 }
 0x67d   :  { %3158 = vrcp.f32 %v604_v25 }
 0x686   :  { %v3157_v26 = vpop.eup %3156 }
 0x687   :  { %v3159_v29 = vpop.eup %3158  ;;  %v536_v32 = vmul.f32 %v3157_v26, %v3471_v45 }
 0x688   :  { %v608_v35 = vmul.f32 %v3159_v29, %v3475_v48  ;;  %v637_v48 = vld [vmem:[#allocation2 + $0x6] sm:$0x3] }
 0x6e7   :  { %v539_v27 = vpop.permute.xlu0 %538 }
 0x6e8   :  { %v541_v28 = vmul.f32 %v3157_v26, %v539_v27 }
 0x6ea   :  { %543 = vrot.lane.b32.xlu0 %v541_v28, %s3276_s15 }
 0x6eb   :  { %v611_v30 = vpop.permute.xlu1 %610 }
 0x6ec   :  { %v613_v31 = vmul.f32 %v3159_v29, %v611_v30 }
 0x6ee   :  { %615 = vrot.lane.b32.xlu1 %v613_v31, %s3276_s15 }
 0x75c   :  { %v544_v33 = vpop.permute.xlu0 %543 }
 0x75d   :  { %v3509_v34 = vadd.f32 %v544_v33, %v536_v32 }
 0x75f   :  { %3160 = vtanh.f32 %v3509_v34 }
 0x760   :  { %v616_v36 = vpop.permute.xlu1 %615 }
 0x761   :  { %v3513_v37 = vadd.f32 %v616_v36, %v608_v35 }
 0x763   :  { %3162 = vtanh.f32 %v3513_v37 }
 0x769   :  { %v3161_v38 = vpop.eup %3160 }
 0x76a   :  { %549 = vrot.lane.b32.xlu0 %v3161_v38, %s3275_s2 }
 0x76d   :  { %v3163_v39 = vpop.eup %3162 }
 0x76e   :  { %621 = vrot.lane.b32.xlu1 %v3163_v39, %s3275_s2 }
 0x7dc   :  { %v550_v40 = vpop.permute.xlu0 %549 }
 0x7dd   :  { %v3518_v41 = vmul.f32 %v3157_v26, %v550_v40 }
 0x7df   :  { %v639_v42 = vpack.c.bf16 %v3518_v41, %v3518_v41 }
 0x7e0   :  { %v622_v43 = vpop.permute.xlu1 %621 }
 0x7e1   :  { %v3522_v44 = vmul.f32 %v3159_v29, %v622_v43  ;;  %641 = vrot.lane.b32.xlu0 %v639_v42, %s3276_s15 }
 0x7e3   :  { %v711_v45 = vpack.c.bf16 %v3522_v44, %v3522_v44 }
 0x7e5   :  { %713 = vrot.lane.b32.xlu1 %v711_v45, %s3276_s15  ;;  %v796_v45 = vld [vmem:[#allocation3 + $0x6] sm:$0x3] }
 0x853   :  { %v642_v46 = vpop.permute.xlu0 %641 }
 0x854   :  { %2914 = vmatmul.mubr.msk.bf16.vlgmr.msra.gmra.mrb[12].mxu1 %vm161_vm3, %v642_v46 }
 0x855   :  { %2926 = vmatpush3.bf16.msra.mxu1 %v3373_v9  ;;  %2929 = vmatprep.mubr.msk.bf16.mxu1 %vm3274_vm1, %v3273_v7 }
 0x856   :  { %2927 = vmatprep.subr.bf16.mxu1 %v3273_v7 }
 0x857   :  { %v714_v47 = vpop.permute.xlu1 %713 }
 0x858   :  { %2922 = vmatmul.mubr.msk.bf16.vlgmr.msra.gmra.mrb[16].mxu0 %vm161_vm3, %v714_v47 }
 0x859   :  { %2934 = vmatpush3.bf16.msra.mxu0 %v3387_v13  ;;  %2928 = vmatpush3.bf16.msra.mxu1 %v3381_v11 }
 0x85a   :  { %2935 = vmatprep.subr.bf16.mxu0 %v3273_v7  ;;  %2937 = vmatprep.mubr.msk.bf16.mxu0 %vm3274_vm1, %v3273_v7 }
 0x85b   :  { %2941 = vmatprep.subr.bf16.mxu1 %v3273_v7 }
 0x85d   :  { %2936 = vmatpush3.bf16.msra.mxu0 %v3394_v14 }
 0x85e   :  { %2949 = vmatprep.subr.bf16.mxu0 %v3273_v7 }
 0x927   :  { %v680_v49 = vpop.f32.mrb[12].mxu1 }
 0x928   :  { %v686_v50 = vadd.f32 %v680_v49, %v637_v48  ;;  %v2915_v51 = vpop.f32.mrb[13].mxu1 }
 0x929   :  { %v683_v53 = vpop.f32.mrb[14].mxu1 }
 0x92a   :  { %3164 = vtanh.f32 %v686_v50  ;;  %v2916_v54 = vpop.f32.mrb[15].mxu1  ;;  %v2604_v0 = vmul.f32 -1.442695, %v686_v50 }
 0x92b   :  { %v752_v57 = vpop.f32.mrb[16].mxu0 }
 0x92c   :  { %v758_v58 = vadd.f32 %v752_v57, %v638_v56  ;;  %v2923_v59 = vpop.f32.mrb[17].mxu0 }
 0x92d   :  { %v755_v60 = vpop.f32.mrb[18].mxu0 }
 0x92e   :  { %3166 = vtanh.f32 %v758_v58  ;;  %v2924_v61 = vpop.f32.mrb[19].mxu0  ;;  %v2606_v2 = vmul.f32 -1.442695, %v758_v58 }
 0x92f   :  { %3168 = vpow2.f32 %v2604_v0 }
 0x930   :  { %3170 = vpow2.f32 %v2606_v2 }
 0x934   :  { %v3165_v62 = vpop.eup %3164 }
 0x935   :  { %696 = vrot.lane.b32.xlu0 %v3165_v62, %s3275_s2 }
 0x938   :  { %v3167_v63 = vpop.eup %3166 }
 0x939   :  { %768 = vrot.lane.b32.xlu1 %v3167_v63, %s3275_s2  ;;  %v3169_v4 = vpop.eup %3168 }
 0x93a   :  { %v690_v6 = vadd.f32 1.0, %v3169_v4  ;;  %v3171_v8 = vpop.eup %3170 }
 0x93b   :  { %v762_v10 = vadd.f32 1.0, %v3171_v8 }
 0x93c   :  { %3172 = vrcp.f32 %v690_v6 }
 0x93d   :  { %3174 = vrcp.f32 %v762_v10 }
 0x946   :  { %v3173_v12 = vpop.eup %3172 }
 0x947   :  { %v3175_v20 = vpop.eup %3174  ;;  %v694_v23 = vmul.f32 %v3173_v12, %v3509_v34 }
 0x948   :  { %v766_v26 = vmul.f32 %v3175_v20, %v3513_v37 }
 0x9a7   :  { %v697_v15 = vpop.permute.xlu0 %696 }
 0x9a8   :  { %v699_v18 = vmul.f32 %v3173_v12, %v697_v15 }
 0x9aa   :  { %701 = vrot.lane.b32.xlu0 %v699_v18, %s3276_s15 }
 0x9ab   :  { %v769_v21 = vpop.permute.xlu1 %768 }
 0x9ac   :  { %v771_v22 = vmul.f32 %v3175_v20, %v769_v21 }
 0x9ae   :  { %773 = vrot.lane.b32.xlu1 %v771_v22, %s3276_s15 }
 0xa1c   :  { %v702_v24 = vpop.permute.xlu0 %701 }
 0xa1d   :  { %v3547_v25 = vadd.f32 %v702_v24, %v694_v23 }
 0xa1f   :  { %3176 = vtanh.f32 %v3547_v25 }
 0xa20   :  { %v774_v27 = vpop.permute.xlu1 %773 }
 0xa21   :  { %v3551_v28 = vadd.f32 %v774_v27, %v766_v26  ;;  %v3608_v27 = vld [vmem:[%s4116_s3] sm:$0xff]  }
 0xa23   :  { %3178 = vtanh.f32 %v3551_v28 }
 0xa29   :  { %v3177_v29 = vpop.eup %3176 }
 0xa2a   :  { %707 = vrot.lane.b32.xlu0 %v3177_v29, %s3275_s2  ;;  %v3618_v29 = vld [vmem:[%s4117_s4] sm:$0xff]  }
 0xa2d   :  { %v3179_v30 = vpop.eup %3178 }
 0xa2e   :  { %779 = vrot.lane.b32.xlu1 %v3179_v30, %s3275_s2  ;;  %v3624_v30 = vld [vmem:[%s4116_s3 + $0x8] sm:$0xff]  }
 0xa9c   :  { %v708_v31 = vpop.permute.xlu0 %707 }
 0xa9d   :  { %v3556_v32 = vmul.f32 %v3173_v12, %v708_v31  ;;  %v3634_v31 = vld [vmem:[%s4117_s4 + $0x8] sm:$0xff]  }
 0xa9f   :  { %v797_v33 = vpack.c.bf16 %v3556_v32, %v3556_v32 }
 0xaa0   :  { %v780_v34 = vpop.permute.xlu1 %779 }
 0xaa1   :  { %v3560_v35 = vmul.f32 %v3175_v20, %v780_v34  ;;  %799 = vrot.lane.b32.xlu0 %v797_v33, %s3276_s15  ;;  %v953_v33 = vld [vmem:[#allocation2 + $0xa] sm:$0x3] }
 0xaa3   :  { %v869_v36 = vpack.c.bf16 %v3560_v35, %v3560_v35 }
 0xaa5   :  { %871 = vrot.lane.b32.xlu1 %v869_v36, %s3276_s15 }
 0xb13   :  { %v800_v37 = vpop.permute.xlu0 %799 }
 0xb14   :  { %2930 = vmatmul.mubr.msk.bf16.vlgmr.msra.gmra.mrb[16].mxu1 %vm161_vm3, %v800_v37 }
 0xb15   :  { %2942 = vmatpush3.bf16.msra.mxu1 %v3373_v9  ;;  %2945 = vmatprep.mubr.msk.bf16.mxu1 %vm3274_vm1, %v3273_v7  ;;  %v795_v9 = vld [vmem:[#allocation2 + $0x8] sm:$0x3] }
 0xb16   :  { %2943 = vmatprep.subr.bf16.mxu1 %v3273_v7 }
 0xb17   :  { %v872_v38 = vpop.permute.xlu1 %871 }
 0xb18   :  { %2938 = vmatmul.mubr.msk.bf16.vlgmr.msra.gmra.mrb[20].mxu0 %vm161_vm3, %v872_v38 }
 0xb19   :  { %2950 = vmatpush3.bf16.msra.mxu0 %v3387_v13  ;;  %2944 = vmatpush3.bf16.msra.mxu1 %v3381_v11 }
 0xb1a   :  { %2951 = vmatprep.subr.bf16.mxu0 %v3273_v7  ;;  %2953 = vmatprep.mubr.msk.bf16.mxu0 %vm3274_vm1, %v3273_v7 }
 0xb1b   :  { %2957 = vmatprep.subr.bf16.mxu1 %v3273_v7 }
 0xb1d   :  { %2952 = vmatpush3.bf16.msra.mxu0 %v3394_v14 }
 0xb1e   :  { %2965 = vmatprep.subr.bf16.mxu0 %v3273_v7 }
 0xbe7   :  { %v838_v39 = vpop.f32.mrb[16].mxu1 }
 0xbe8   :  { %v844_v40 = vadd.f32 %v838_v39, %v795_v9  ;;  %v2931_v42 = vpop.f32.mrb[17].mxu1  ;;  %v954_v39 = vld [vmem:[#allocation3 + $0x4] sm:$0x3] }
 0xbe9   :  { %v841_v43 = vpop.f32.mrb[18].mxu1 }
 0xbea   :  { %3180 = vtanh.f32 %v844_v40  ;;  %v2932_v13 = vpop.f32.mrb[19].mxu1  ;;  %v2608_v51 = vmul.f32 -1.442695, %v844_v40 }
 0xbeb   :  { %v910_v11 = vpop.f32.mrb[20].mxu0 }
 0xbec   :  { %v916_v46 = vadd.f32 %v910_v11, %v796_v45  ;;  %v2939_v47 = vpop.f32.mrb[21].mxu0 }
 0xbed   :  { %v913_v48 = vpop.f32.mrb[22].mxu0 }
 0xbee   :  { %3182 = vtanh.f32 %v916_v46  ;;  %v2940_v49 = vpop.f32.mrb[23].mxu0  ;;  %v2610_v53 = vmul.f32 -1.442695, %v916_v46 }
 0xbef   :  { %3184 = vpow2.f32 %v2608_v51 }
 0xbf0   :  { %3186 = vpow2.f32 %v2610_v53 }
 0xbf4   :  { %v3181_v50 = vpop.eup %3180 }
 0xbf5   :  { %854 = vrot.lane.b32.xlu0 %v3181_v50, %s3275_s2 }
 0xbf8   :  { %v3183_v14 = vpop.eup %3182 }
 0xbf9   :  { %926 = vrot.lane.b32.xlu1 %v3183_v14, %s3275_s2  ;;  %v3185_v54 = vpop.eup %3184 }
 0xbfa   :  { %v848_v56 = vadd.f32 1.0, %v3185_v54  ;;  %v3187_v57 = vpop.eup %3186 }
 0xbfb   :  { %v920_v58 = vadd.f32 1.0, %v3187_v57 }
 0xbfc   :  { %3188 = vrcp.f32 %v848_v56 }
 0xbfd   :  { %3190 = vrcp.f32 %v920_v58 }
 0xc06   :  { %v3189_v59 = vpop.eup %3188 }
 0xc07   :  { %v3191_v62 = vpop.eup %3190  ;;  %v852_v2 = vmul.f32 %v3189_v59, %v3547_v25 }
 0xc08   :  { %v924_v8 = vmul.f32 %v3191_v62, %v3551_v28 }
 0xc67   :  { %v855_v60 = vpop.permute.xlu0 %854 }
 0xc68   :  { %v857_v61 = vmul.f32 %v3189_v59, %v855_v60 }
 0xc6a   :  { %859 = vrot.lane.b32.xlu0 %v857_v61, %s3276_s15 }
 0xc6b   :  { %v927_v63 = vpop.permute.xlu1 %926 }
 0xc6c   :  { %v929_v0 = vmul.f32 %v3191_v62, %v927_v63 }
 0xc6e   :  { %931 = vrot.lane.b32.xlu1 %v929_v0, %s3276_s15 }
 0xcdc   :  { %v860_v4 = vpop.permute.xlu0 %859 }
 0xcdd   :  { %v3585_v6 = vadd.f32 %v860_v4, %v852_v2 }
 0xcdf   :  { %3192 = vtanh.f32 %v3585_v6 }
 0xce0   :  { %v932_v10 = vpop.permute.xlu1 %931 }
 0xce1   :  { %v3589_v12 = vadd.f32 %v932_v10, %v924_v8 }
 0xce3   :  { %3194 = vtanh.f32 %v3589_v12 }
 0xce9   :  { %v3193_v15 = vpop.eup %3192 }
 0xcea   :  { %865 = vrot.lane.b32.xlu0 %v3193_v15, %s3275_s2 }
 0xced   :  { %v3195_v18 = vpop.eup %3194 }
 0xcee   :  { %937 = vrot.lane.b32.xlu1 %v3195_v18, %s3275_s2 }
 0xd5c   :  { %v866_v20 = vpop.permute.xlu0 %865 }
 0xd5d   :  { %v3594_v21 = vmul.f32 %v3189_v59, %v866_v20 }
 0xd5f   :  { %v955_v22 = vpack.c.bf16 %v3594_v21, %v3594_v21 }
 0xd60   :  { %v938_v23 = vpop.permute.xlu1 %937 }
 0xd61   :  { %v3598_v24 = vmul.f32 %v3191_v62, %v938_v23  ;;  %957 = vrot.lane.b32.xlu0 %v955_v22, %s3276_s15 }
 0xd63   :  { %v1027_v25 = vpack.c.bf16 %v3598_v24, %v3598_v24 }
 0xd65   :  { %1029 = vrot.lane.b32.xlu1 %v1027_v25, %s3276_s15  ;;  %v1111_v25 = vld [vmem:[#allocation2 + $0xc] sm:$0x3] }
 0xdd3   :  { %v958_v26 = vpop.permute.xlu0 %957 }
 0xdd4   :  { %2946 = vmatmul.mubr.msk.bf16.vlgmr.msra.gmra.mrb[20].mxu1 %vm161_vm3, %v958_v26 }
 0xdd5   :  { %2958 = vmatpush3.bf16.msra.mxu1 %v3608_v27  ;;  %2961 = vmatprep.mubr.msk.bf16.mxu1 %vm3274_vm1, %v3273_v7 }
 0xdd6   :  { %2959 = vmatprep.subr.bf16.mxu1 %v3273_v7 }
 0xdd7   :  { %v1030_v28 = vpop.permute.xlu1 %1029 }
 0xdd8   :  { %2954 = vmatmul.mubr.msk.bf16.vlgmr.msra.gmra.mrb[24].mxu0 %vm161_vm3, %v1030_v28 }
 0xdd9   :  { %2966 = vmatpush3.bf16.msra.mxu0 %v3618_v29  ;;  %2960 = vmatpush3.bf16.msra.mxu1 %v3624_v30 }
 0xdda   :  { %2967 = vmatprep.subr.bf16.mxu0 %v3273_v7  ;;  %2969 = vmatprep.mubr.msk.bf16.mxu0 %vm3274_vm1, %v3273_v7 }
 0xddb   :  { %2973 = vmatprep.subr.bf16.mxu1 %v3273_v7 }
 0xddd   :  { %2968 = vmatpush3.bf16.msra.mxu0 %v3634_v31 }
 0xdde   :  { %2981 = vmatprep.subr.bf16.mxu0 %v3273_v7 }
 0xea7   :  { %v996_v34 = vpop.f32.mrb[20].mxu1 }
 0xea8   :  { %v1002_v36 = vadd.f32 %v996_v34, %v953_v33  ;;  %v2947_v37 = vpop.f32.mrb[21].mxu1 }
 0xea9   :  { %v999_v38 = vpop.f32.mrb[22].mxu1 }
 0xeaa   :  { %3196 = vtanh.f32 %v1002_v36  ;;  %v2948_v9 = vpop.f32.mrb[23].mxu1  ;;  %v2612_v47 = vmul.f32 -1.442695, %v1002_v36  ;;  %v1112_v36 = vld [vmem:[#allocation3 + $0x2] sm:$0x3] }
 0xeab   :  { %v1068_v40 = vpop.f32.mrb[24].mxu0 }
 0xeac   :  { %v1074_v42 = vadd.f32 %v1068_v40, %v954_v39  ;;  %v2955_v43 = vpop.f32.mrb[25].mxu0 }
 0xead   :  { %v1071_v13 = vpop.f32.mrb[26].mxu0 }
 0xeae   :  { %3198 = vtanh.f32 %v1074_v42  ;;  %v2956_v45 = vpop.f32.mrb[27].mxu0  ;;  %v2614_v48 = vmul.f32 -1.442695, %v1074_v42 }
 0xeaf   :  { %3200 = vpow2.f32 %v2612_v47 }
 0xeb0   :  { %3202 = vpow2.f32 %v2614_v48 }
 0xeb4   :  { %v3197_v11 = vpop.eup %3196 }
 0xeb5   :  { %1012 = vrot.lane.b32.xlu0 %v3197_v11, %s3275_s2 }
 0xeb8   :  { %v3199_v46 = vpop.eup %3198 }
 0xeb9   :  { %1084 = vrot.lane.b32.xlu1 %v3199_v46, %s3275_s2  ;;  %v3201_v49 = vpop.eup %3200 }
 0xeba   :  { %v1006_v50 = vadd.f32 1.0, %v3201_v49  ;;  %v3203_v14 = vpop.eup %3202 }
 0xebb   :  { %v1078_v51 = vadd.f32 1.0, %v3203_v14 }
 0xebc   :  { %3204 = vrcp.f32 %v1006_v50 }
 0xebd   :  { %3206 = vrcp.f32 %v1078_v51 }
 0xec6   :  { %v3205_v53 = vpop.eup %3204 }
 0xec7   :  { %v3207_v57 = vpop.eup %3206  ;;  %v1010_v60 = vmul.f32 %v3205_v53, %v3585_v6 }
 0xec8   :  { %v1082_v63 = vmul.f32 %v3207_v57, %v3589_v12 }
 0xf27   :  { %v1013_v54 = vpop.permute.xlu0 %1012 }
 0xf28   :  { %v1015_v56 = vmul.f32 %v3205_v53, %v1013_v54 }
 0xf2a   :  { %1017 = vrot.lane.b32.xlu0 %v1015_v56, %s3276_s15 }
 0xf2b   :  { %v1085_v58 = vpop.permute.xlu1 %1084 }
 0xf2c   :  { %v1087_v59 = vmul.f32 %v3207_v57, %v1085_v58 }
 0xf2e   :  { %1089 = vrot.lane.b32.xlu1 %v1087_v59, %s3276_s15 }
 0xf9c   :  { %v1018_v61 = vpop.permute.xlu0 %1017 }
 0xf9d   :  { %v3643_v62 = vadd.f32 %v1018_v61, %v1010_v60 }
 0xf9f   :  { %3208 = vtanh.f32 %v3643_v62 }
 0xfa0   :  { %v1090_v0 = vpop.permute.xlu1 %1089 }
 0xfa1   :  { %v3647_v2 = vadd.f32 %v1090_v0, %v1082_v63 }
 0xfa3   :  { %3210 = vtanh.f32 %v3647_v2 }
 0xfa9   :  { %v3209_v4 = vpop.eup %3208 }
 0xfaa   :  { %1023 = vrot.lane.b32.xlu0 %v3209_v4, %s3275_s2 }
 0xfad   :  { %v3211_v8 = vpop.eup %3210 }
 0xfae   :  { %1095 = vrot.lane.b32.xlu1 %v3211_v8, %s3275_s2 }
0x101c   :  { %v1024_v10 = vpop.permute.xlu0 %1023 }
0x101d   :  { %v3652_v6 = vmul.f32 %v3205_v53, %v1024_v10  ;;  %v1269_v10 = vld [vmem:[#allocation2 + $0xe] sm:$0x3] }
0x101f   :  { %v1113_v15 = vpack.c.bf16 %v3652_v6, %v3652_v6 }
0x1020   :  { %v1096_v18 = vpop.permute.xlu1 %1095 }
0x1021   :  { %v3656_v20 = vmul.f32 %v3207_v57, %v1096_v18  ;;  %1115 = vrot.lane.b32.xlu0 %v1113_v15, %s3276_s15 }
0x1023   :  { %v1185_v12 = vpack.c.bf16 %v3656_v20, %v3656_v20 }
0x1025   :  { %1187 = vrot.lane.b32.xlu1 %v1185_v12, %s3276_s15 }
0x1093   :  { %v1116_v22 = vpop.permute.xlu0 %1115 }
0x1094   :  { %2962 = vmatmul.mubr.msk.bf16.vlgmr.msra.gmra.mrb[24].mxu1 %vm161_vm3, %v1116_v22 }
0x1095   :  { %2974 = vmatpush3.bf16.msra.mxu1 %v3608_v27  ;;  %2977 = vmatprep.mubr.msk.bf16.mxu1 %vm3274_vm1, %v3273_v7 }
0x1096   :  { %2975 = vmatprep.subr.bf16.mxu1 %v3273_v7 }
0x1097   :  { %v1188_v23 = vpop.permute.xlu1 %1187 }
0x1098   :  { %2970 = vmatmul.mubr.msk.bf16.vlgmr.msra.gmra.mrb[28].mxu0 %vm161_vm3, %v1188_v23 }
0x1099   :  { %2982 = vmatpush3.bf16.msra.mxu0 %v3618_v29  ;;  %2976 = vmatpush3.bf16.msra.mxu1 %v3624_v30 }
0x109a   :  { %2983 = vmatprep.subr.bf16.mxu0 %v3273_v7  ;;  %2985 = vmatprep.mubr.msk.bf16.mxu0 %vm3274_vm1, %v3273_v7 }
0x109d   :  { %2984 = vmatpush3.bf16.msra.mxu0 %v3634_v31 }
0x1167   :  { %v1154_v26 = vpop.f32.mrb[24].mxu1 }
0x1168   :  { %v1160_v27 = vadd.f32 %v1154_v26, %v1111_v25  ;;  %v2963_v28 = vpop.f32.mrb[25].mxu1  ;;  %v1270_v25 = vld [vmem:[#allocation3] sm:$0x3] }
0x1169   :  { %v1157_v33 = vpop.f32.mrb[26].mxu1 }
0x116a   :  { %3212 = vtanh.f32 %v1160_v27  ;;  %v2964_v34 = vpop.f32.mrb[27].mxu1  ;;  %v2616_v31 = vmul.f32 -1.442695, %v1160_v27 }
0x116b   :  { %v1226_v37 = vpop.f32.mrb[28].mxu0 }
0x116c   :  { %v1232_v38 = vadd.f32 %v1226_v37, %v1112_v36  ;;  %v2971_v29 = vpop.f32.mrb[29].mxu0 }
0x116d   :  { %v1229_v9 = vpop.f32.mrb[30].mxu0 }
0x116e   :  { %3214 = vtanh.f32 %v1232_v38  ;;  %v2972_v30 = vpop.f32.mrb[31].mxu0  ;;  %v2618_v40 = vmul.f32 -1.442695, %v1232_v38 }
0x116f   :  { %3216 = vpow2.f32 %v2616_v31 }
0x1170   :  { %3218 = vpow2.f32 %v2618_v40 }
0x1174   :  { %v3213_v39 = vpop.eup %3212 }
0x1175   :  { %1170 = vrot.lane.b32.xlu0 %v3213_v39, %s3275_s2 }
0x1178   :  { %v3215_v7 = vpop.eup %3214 }
0x1179   :  { %1242 = vrot.lane.b32.xlu1 %v3215_v7, %s3275_s2  ;;  %v3217_v42 = vpop.eup %3216 }
0x117a   :  { %v1164_v43 = vadd.f32 1.0, %v3217_v42  ;;  %v3219_v13 = vpop.eup %3218 }
0x117b   :  { %v1236_v45 = vadd.f32 1.0, %v3219_v13 }
0x117c   :  { %3220 = vrcp.f32 %v1164_v43 }
0x117d   :  { %3222 = vrcp.f32 %v1236_v45 }
0x1186   :  { %v3221_v11 = vpop.eup %3220 }
0x1187   :  { %v3223_v48 = vpop.eup %3222  ;;  %v1168_v14 = vmul.f32 %v3221_v11, %v3643_v62 }
0x1188   :  { %v1240_v54 = vmul.f32 %v3223_v48, %v3647_v2 }
0x11e7   :  { %v1171_v46 = vpop.permute.xlu0 %1170 }
0x11e8   :  { %v1173_v47 = vmul.f32 %v3221_v11, %v1171_v46 }
0x11ea   :  { %1175 = vrot.lane.b32.xlu0 %v1173_v47, %s3276_s15 }
0x11eb   :  { %v1243_v49 = vpop.permute.xlu1 %1242 }
0x11ec   :  { %v1245_v50 = vmul.f32 %v3223_v48, %v1243_v49 }
0x11ee   :  { %1247 = vrot.lane.b32.xlu1 %v1245_v50, %s3276_s15 }
0x125c   :  { %v1176_v51 = vpop.permute.xlu0 %1175 }
0x125d   :  { %v1178_v53 = vadd.f32 %v1176_v51, %v1168_v14 }
0x125f   :  { %3224 = vtanh.f32 %v1178_v53 }
0x1260   :  { %v1248_v56 = vpop.permute.xlu1 %1247 }
0x1261   :  { %v1250_v57 = vadd.f32 %v1248_v56, %v1240_v54  ;;  %v3006_v54 = vld [vmem:[%s4118_s5 + $0x4] ss:$16 sps:$4 sm:$0xff]   ;;  %v3007_v56 = vld [vmem:[%s4118_s5 + $0x8] ss:$16 sps:$4 sm:$0xff]  }
0x1262   :  { %1552 = vmatprep.subr.bf16.mxu1 %v3006_v54  ;;  %v3036_v54 = vld [vmem:[%s4120_s7 + $0x50] sm:$0xff]  }
0x1263   :  { %3226 = vtanh.f32 %v1250_v57 }
0x1269   :  { %v3225_v58 = vpop.eup %3224 }
0x126a   :  { %1181 = vrot.lane.b32.xlu0 %v3225_v58, %s3275_s2  ;;  %v3010_v58 = vld [vmem:[%s4118_s5 + $0x20] ss:$16 sps:$4 sm:$0xff]  }
0x126d   :  { %v3227_v59 = vpop.eup %3226 }
0x126e   :  { %1253 = vrot.lane.b32.xlu1 %v3227_v59, %s3275_s2  ;;  %v3012_v59 = vld [vmem:[%s4118_s5 + $0x24] ss:$16 sps:$4 sm:$0xff]  }
0x12dc   :  { %v1182_v60 = vpop.permute.xlu0 %1181 }
0x12dd   :  { %v3682_v61 = vmul.f32 %v3221_v11, %v1182_v60  ;;  %v3013_v60 = vld [vmem:[%s4118_s5 + $0x28] ss:$16 sps:$4 sm:$0xff]  }
0x12df   :  { %v1271_v62 = vpack.c.bf16 %v3682_v61, %v3682_v61 }
0x12e0   :  { %v1254_v63 = vpop.permute.xlu1 %1253 }
0x12e1   :  { %v3686_v0 = vmul.f32 %v3223_v48, %v1254_v63  ;;  %1273 = vrot.lane.b32.xlu0 %v1271_v62, %s3276_s15  ;;  %v3015_v62 = vld [vmem:[%s4118_s5 + $0x2c] ss:$16 sps:$4 sm:$0xff]   ;;  %v477_v63 = vadd.f32 %v3480_v52, %v3442_v1 }
0x12e3   :  { %v1343_v2 = vpack.c.bf16 %v3686_v0, %v3686_v0 }
0x12e5   :  { %1345 = vrot.lane.b32.xlu1 %v1343_v2, %s3276_s15  ;;  %v3016_v2 = vld [vmem:[%s4118_s5 + $0x40] ss:$16 sps:$4 sm:$0xff]  }
0x1353   :  { %v1274_v4 = vpop.permute.xlu0 %1273 }
0x1354   :  { %2978 = vmatmul.mubr.msk.bf16.vlgmr.msra.gmra.mrb[28].mxu1 %vm161_vm3, %v1274_v4  ;;  %v3018_v4 = vld [vmem:[%s4118_s5 + $0x44] ss:$16 sps:$4 sm:$0xff]  }
0x1355   :  { %1584 = vmatprep.mubr.bf16.mxu1 %v3272_v3 }
0x1357   :  { %v1346_v8 = vpop.permute.xlu1 %1345 }
0x1358   :  { %2986 = vmatmul.mubr.msk.bf16.vlgmr.msra.gmra.mrb[32].mxu0 %vm161_vm3, %v1346_v8  ;;  %v3019_v8 = vld [vmem:[%s4118_s5 + $0x48] ss:$16 sps:$4 sm:$0xff]  }
0x1359   :  { %1627 = vmatprep.mubr.bf16.mxu0 %v3272_v3 }
0x1427   :  { %v1312_v15 = vpop.f32.mrb[28].mxu1 }
0x1428   :  { %v1318_v18 = vadd.f32 %v1312_v15, %v1269_v10  ;;  %v2979_v12 = vpop.f32.mrb[29].mxu1  ;;  %v635_v10 = vadd.f32 %v3518_v41, %v477_v63  ;;  %v3043_v63 = vld [vmem:[%s4120_s7 + $0x98] sm:$0xff]  }
0x1429   :  { %v1315_v22 = vpop.f32.mrb[30].mxu1 }
0x142a   :  { %3228 = vtanh.f32 %v1318_v18  ;;  %v2980_v23 = vpop.f32.mrb[31].mxu1  ;;  %v2620_v38 = vmul.f32 -1.442695, %v1318_v18  ;;  %v793_v15 = vadd.f32 %v3556_v32, %v635_v10  ;;  %v3047_v10 = vld [vmem:[%s4120_s7 + $0xa0] sm:$0xff]  }
0x142b   :  { %v1384_v26 = vpop.f32.mrb[32].mxu0 }
0x142c   :  { %v1390_v27 = vadd.f32 %v1384_v26, %v1270_v25  ;;  %v2987_v28 = vpop.f32.mrb[33].mxu0  ;;  %v951_v12 = vadd.f32 %v3594_v21, %v793_v15  ;;  %v3050_v15 = vld [vmem:[%s4120_s7 + $0x28] sm:$0xff]  }
0x142d   :  { %v1387_v33 = vpop.f32.mrb[34].mxu0  ;;  %v3029_v28 = vld [vmem:[%s4120_s7 + $0xc0] sm:$0xff]  }
0x142e   :  { %3230 = vtanh.f32 %v1390_v27  ;;  %v2988_v34 = vpop.f32.mrb[35].mxu0  ;;  %v2622_v29 = vmul.f32 -1.442695, %v1390_v27  ;;  %v1109_v23 = vadd.f32 %v3652_v6, %v951_v12  ;;  %v3028_v27 = vld [vmem:[%s4120_s7 + $0x40] sm:$0xff]   ;;  %v3052_v12 = vld [vmem:[%s4120_s7 + $0x70] sm:$0xff]  }
0x142f   :  { %3232 = vpow2.f32 %v2620_v38 }
0x1430   :  { %3234 = vpow2.f32 %v2622_v29 }
0x1434   :  { %v3229_v36 = vpop.eup %3228 }
0x1435   :  { %1328 = vrot.lane.b32.xlu0 %v3229_v36, %s3275_s2 }
0x1438   :  { %v3231_v37 = vpop.eup %3230 }
0x1439   :  { %1400 = vrot.lane.b32.xlu1 %v3231_v37, %s3275_s2  ;;  %v3233_v9 = vpop.eup %3232 }
0x143a   :  { %v1322_v30 = vadd.f32 1.0, %v3233_v9  ;;  %v3235_v39 = vpop.eup %3234 }
0x143b   :  { %v1394_v7 = vadd.f32 1.0, %v3235_v39 }
0x143c   :  { %3236 = vrcp.f32 %v1322_v30 }
0x143d   :  { %3238 = vrcp.f32 %v1394_v7 }
0x1446   :  { %v3698_v31 = vpop.eup %3236 }
0x1447   :  { %v3702_v43 = vpop.eup %3238  ;;  %v1326_v11 = vmul.f32 %v3698_v31, %v1178_v53  ;;  %v3004_v53 = vld [vmem:[%s4118_s5] ss:$16 sps:$4 sm:$0xff]  }
0x1448   :  { %v1398_v48 = vmul.f32 %v3702_v43, %v1250_v57  ;;  %v3009_v57 = vld [vmem:[%s4118_s5 + $0xc] ss:$16 sps:$4 sm:$0xff]   ;;  %1553 = vmatpush1.bf16.msra.mxu1 %v3004_v53 }
0x1449   :  { %1595 = vmatprep.subr.bf16.mxu0 %v3009_v57  ;;  %1554 = vmatprep.subr.bf16.mxu1 %v3012_v59  ;;  %v3035_v53 = vld [vmem:[%s4120_s7 + $0x88] sm:$0xff]   ;;  %v3038_v57 = vld [vmem:[%s4120_s7 + $0x10] sm:$0xff]   ;;  %v3040_v59 = vld [vmem:[%s4120_s7 + $0x58] sm:$0xff]  }
0x144a   :  { %1596 = vmatpush1.bf16.msra.mxu0 %v3007_v56  ;;  %v3037_v56 = vld [vmem:[%s4120_s7 + $0xd0] sm:$0xff]  }
0x144b   :  { %1597 = vmatprep.subr.bf16.mxu0 %v3015_v62  ;;  %v3042_v62 = vld [vmem:[%s4120_s7 + $0x18] sm:$0xff]  }
0x144c   :  { %1555 = vmatpush1.bf16.msra.mxu1 %v3010_v58  ;;  %v3039_v58 = vld [vmem:[%s4120_s7 + $0x90] sm:$0xff]  }
0x144d   :  { %1556 = vmatprep.subr.bf16.mxu1 %v3018_v4  ;;  %v3045_v4 = vld [vmem:[%s4120_s7 + $0xe0] sm:$0xff]  }
0x144e   :  { %1598 = vmatpush1.bf16.msra.mxu0 %v3013_v60  ;;  %v3041_v60 = vld [vmem:[%s4120_s7 + $0xd8] sm:$0xff]  }
0x1450   :  { %1557 = vmatpush1.bf16.msra.mxu1 %v3016_v2  ;;  %v3044_v2 = vld [vmem:[%s4120_s7 + $0x60] sm:$0xff]  }
0x14a7   :  { %v1329_v40 = vpop.permute.xlu0 %1328 }
0x14a8   :  { %v1331_v42 = vmul.f32 %v3698_v31, %v1329_v40 }
0x14aa   :  { %1333 = vrot.lane.b32.xlu0 %v1331_v42, %s3276_s15 }
0x14ab   :  { %v1401_v13 = vpop.permute.xlu1 %1400 }
0x14ac   :  { %v1403_v45 = vmul.f32 %v3702_v43, %v1401_v13 }
0x14ae   :  { %1405 = vrot.lane.b32.xlu1 %v1403_v45, %s3276_s15 }
0x151c   :  { %v1334_v46 = vpop.permute.xlu0 %1333 }
0x151d   :  { %v1336_v47 = vadd.f32 %v1334_v46, %v1326_v11  ;;  %v3030_v11 = vld [vmem:[%s4120_s7] sm:$0xff]  }
0x151f   :  { %3240 = vtanh.f32 %v1336_v47 }
0x1520   :  { %v1406_v49 = vpop.permute.xlu1 %1405 }
0x1521   :  { %v1408_v50 = vadd.f32 %v1406_v49, %v1398_v48  ;;  %v3031_v48 = vld [vmem:[%s4120_s7 + $0x80] sm:$0xff]  }
0x1523   :  { %3242 = vtanh.f32 %v1408_v50  ;;  %v3032_v50 = vld [vmem:[%s4120_s7 + $0x48] sm:$0xff]  }
0x1529   :  { %v3241_v14 = vpop.eup %3240 }
0x152a   :  { %1339 = vrot.lane.b32.xlu0 %v3241_v14, %s3275_s2  ;;  %v3033_v14 = vld [vmem:[%s4120_s7 + $0xc8] sm:$0xff]  }
0x152d   :  { %v3243_v51 = vpop.eup %3242 }
0x152e   :  { %1411 = vrot.lane.b32.xlu1 %v3243_v51, %s3275_s2  ;;  %308 = vrot.lane.b32.xlu0 %v3442_v1, %s3276_s15  ;;  %v3021_v1 = vld [vmem:[%s4118_s5 + $0x4c] ss:$16 sps:$4 sm:$0xff]  }
0x152f   :  { %1599 = vmatprep.subr.bf16.mxu0 %v3021_v1  ;;  %v3034_v51 = vld [vmem:[%s4120_s7 + $0x8] sm:$0xff]  }
0x1530   :  { %1600 = vmatpush1.bf16.msra.mxu0 %v3019_v8  ;;  %v3046_v8 = vld [vmem:[%s4120_s7 + $0x20] sm:$0xff]   ;;  %v3048_v1 = vld [vmem:[%s4120_s7 + $0x68] sm:$0xff]  }
0x1532   :  { %314 = vrot.lane.b32.xlu1 %v3446_v5, %s3275_s2  ;;  %468 = vrot.lane.b32.xlu0 %v3480_v52, %s3276_s15  ;;  %v478_v52 = vadd.f32 %v3484_v55, %v3446_v5  ;;  %v3022_v5 = vld [vmem:[%s4118_s5 + $0x60] ss:$16 sps:$4 sm:$0xff]  }
0x1534   :  { %v636_v18 = vadd.f32 %v3522_v44, %v478_v52  ;;  %v3049_v52 = vld [vmem:[%s4120_s7 + $0xe8] sm:$0xff]  }
0x1536   :  { %473 = vrot.lane.b32.xlu1 %v3484_v55, %s3275_s2  ;;  %626 = vrot.lane.b32.xlu0 %v3518_v41, %s3276_s15  ;;  %v794_v41 = vadd.f32 %v3560_v35, %v636_v18  ;;  %v3024_v55 = vld [vmem:[%s4118_s5 + $0x64] ss:$16 sps:$4 sm:$0xff]   ;;  %v3051_v18 = vld [vmem:[%s4120_s7 + $0xa8] sm:$0xff]  }
0x1537   :  { %1558 = vmatprep.subr.bf16.mxu1 %v3024_v55  ;;  %v3058_v55 = vld [vmem:[%s4120_s7 + $0x38] sm:$0xff]  }
0x1538   :  { %1559 = vmatpush1.bf16.msra.mxu1 %v3022_v5  ;;  %v3057_v5 = vld [vmem:[%s4120_s7 + $0xf8] sm:$0xff]  }
0x1539   :  { %2773 = vmatprep.subr.bf16.mxu1 %v3028_v27 }
0x153a   :  { %631 = vrot.lane.b32.xlu1 %v3522_v44, %s3275_s2  ;;  %784 = vrot.lane.b32.xlu0 %v3556_v32, %s3276_s15  ;;  %v3025_v44 = vld [vmem:[%s4118_s5 + $0x68] ss:$16 sps:$4 sm:$0xff]   ;;  %v3027_v32 = vld [vmem:[%s4118_s5 + $0x6c] ss:$16 sps:$4 sm:$0xff]  }
0x153b   :  { %1601 = vmatprep.subr.bf16.mxu0 %v3027_v32  ;;  %v3062_v32 = vld [vmem:[%s4122_s9 + $0x4] ss:$16 sps:$4 sm:$0xff]  }
0x153c   :  { %1602 = vmatpush1.bf16.msra.mxu0 %v3025_v44  ;;  %v3059_v44 = vld [vmem:[%s4120_s7 + $0xb8] sm:$0xff]  }
0x153d   :  { %2795 = vmatprep.subr.bf16.mxu0 %v3029_v28 }
0x153e   :  { %789 = vrot.lane.b32.xlu1 %v3560_v35, %s3275_s2  ;;  %942 = vrot.lane.b32.xlu0 %v3594_v21, %s3276_s15  ;;  %v952_v35 = vadd.f32 %v3598_v24, %v794_v41  ;;  %v1267_v21 = vadd.f32 %v3682_v61, %v1109_v23  ;;  %v3054_v41 = vld [vmem:[%s4120_s7 + $0x30] sm:$0xff]  }
0x153f   :  { %v3055_v23 = vld [vmem:[%s4120_s7 + $0xb0] sm:$0xff]  }
0x1540   :  { %v1110_v33 = vadd.f32 %v3656_v20, %v952_v35  ;;  %v3065_v35 = vld [vmem:[%s4122_s9 + $0xc] ss:$16 sps:$4 sm:$0xff]  }
0x1542   :  { %947 = vrot.lane.b32.xlu1 %v3598_v24, %s3275_s2  ;;  %1100 = vrot.lane.b32.xlu0 %v3652_v6, %s3276_s15  ;;  %v1268_v34 = vadd.f32 %v3686_v0, %v1110_v33 }
0x1546   :  { %1105 = vrot.lane.b32.xlu1 %v3656_v20, %s3275_s2  ;;  %1258 = vrot.lane.b32.xlu0 %v3682_v61, %s3276_s15 }
0x154a   :  { %1263 = vrot.lane.b32.xlu1 %v3686_v0, %s3275_s2 }
0x159c   :  { %v1340_v22 = vpop.permute.xlu0 %1339 }
0x159d   :  { %v1342_v25 = vmul.f32 %v3698_v31, %v1340_v22  ;;  %v3053_v22 = vld [vmem:[%s4120_s7 + $0xf0] sm:$0xff]  }
0x159f   :  { %1416 = vrot.lane.b32.xlu0 %v1342_v25, %s3276_s15  ;;  %v1425_v24 = vadd.f32 %v1342_v25, %v1267_v21  ;;  %v3056_v25 = vld [vmem:[%s4120_s7 + $0x78] sm:$0xff]   ;;  %v1458_v21 = vsub.s32 2, %v3417_v16 }
0x15a0   :  { %v1412_v6 = vpop.permute.xlu1 %1411  ;;  %v309_v26 = vpop.permute.xlu0 %308 }
0x15a1   :  { %v1414_v61 = vmul.f32 %v3702_v43, %v1412_v6  ;;  %312 = vst.msk [vmem:[#allocation4] sm:$0x3] %vm311_vm4, %v309_v26  ;;  %v1446_v6 = vld [vmem:[%s4119_s6] sm:$0xf]  ;;  %v1462_v26 = vsub.s32 3, %v3417_v16  ;;  %s2573_s6 = sshll.u32 %s3277_s21, 4  ;;  %s2574_s6 = int_to_ptr.vmem [resolvable:$true] %s2573_s6 }
0x15a2   :  { %v1451_v27 = vrot.slane %v1446_v6, %v3420_v17  ;;  %v1459_v28 = vrot.slane %v1446_v6, %v1458_v21  ;;  %v1455_v33 = vrot.slane %v1446_v6, %v3426_v19  ;;  %s3248_s7 = scalar_lea.vmem %s2574_s6, 32  ;;  %p3253_p1 = scmp.lt.s32.totalorder %s2574_s6, %s2574_s6 }
0x15a3   :  { %1421 = vrot.lane.b32.xlu1 %v1414_v61, %s3275_s2  ;;  %1999 = vrot.lane.b32.xlu0 %v1425_v24, %s3276_s15  ;;  %v1426_v38 = vadd.f32 %v1414_v61, %v1268_v34  ;;  %v1463_v24 = vrot.slane %v1446_v6, %v1462_v26  ;;  %v3091_v6 = vld [vmem:[%s4124_s11 + $0x88] sm:$0xff]   ;;  %p3249_p0 = scmp.ne.s32.totalorder %s2574_s6, %s3248_s7  ;;  %p3254_p2 = scmp.lt.s32.totalorder %s3248_s7, %s3248_s7 }
0x15a4   :  { %v315_v36 = vpop.permute.xlu1 %314  ;;  %v469_v37 = vpop.permute.xlu0 %468 }
0x15a5   :  { %318 = vst.msk [vmem:[#allocation4 + $0xe] sm:$0x3] %vm317_vm5, %v315_v36  ;;  %p3255_p3 = por %p3254_p2, %p3253_p1 }
0x15a6   :  { %471 = vst.msk [vmem:[#allocation4 + $0x2] sm:$0x3] %vm311_vm4, %v469_v37 }
0x15a7   :  { %2003 = vrot.lane.b32.xlu1 %v1426_v38, %s3275_s2  ;;  %p3256_p4 = pnand %p3255_p3, %p3249_p0 }
0x15a8   :  { %v474_v20 = vpop.permute.xlu1 %473  ;;  %v627_v29 = vpop.permute.xlu0 %626 }
0x15a9   :  { %476 = vst.msk [vmem:[#allocation4 + $0xc] sm:$0x3] %vm317_vm5, %v474_v20 }
0x15aa   :  { %629 = vst.msk [vmem:[#allocation4 + $0x4] sm:$0x3] %vm311_vm4, %v627_v29 }
0x15ac   :  { %v632_v0 = vpop.permute.xlu1 %631  ;;  %v785_v9 = vpop.permute.xlu0 %784 }
0x15ad   :  { %634 = vst.msk [vmem:[#allocation4 + $0xa] sm:$0x3] %vm317_vm5, %v632_v0 }
0x15ae   :  { %787 = vst.msk [vmem:[#allocation4 + $0x6] sm:$0x3] %vm311_vm4, %v785_v9 }
0x15b0   :  { %v790_v30 = vpop.permute.xlu1 %789  ;;  %v943_v39 = vpop.permute.xlu0 %942 }
0x15b1   :  { %792 = vst.msk [vmem:[#allocation4 + $0x8] sm:$0x3] %vm317_vm5, %v790_v30 }
0x15b2   :  { %945 = vst.msk [vmem:[#allocation4 + $0x8] sm:$0x3] %vm311_vm4, %v943_v39 }
0x15b4   :  { %v948_v7 = vpop.permute.xlu1 %947  ;;  %v1101_v31 = vpop.permute.xlu0 %1100 }
0x15b5   :  { %950 = vst.msk [vmem:[#allocation4 + $0x6] sm:$0x3] %vm317_vm5, %v948_v7 }
0x15b6   :  { %1103 = vst.msk [vmem:[#allocation4 + $0xa] sm:$0x3] %vm311_vm4, %v1101_v31 }
0x15b8   :  { %v1106_v40 = vpop.permute.xlu1 %1105  ;;  %v1259_v42 = vpop.permute.xlu0 %1258 }
0x15b9   :  { %1108 = vst.msk [vmem:[#allocation4 + $0x4] sm:$0x3] %vm317_vm5, %v1106_v40 }
0x15ba   :  { %1261 = vst.msk [vmem:[#allocation4 + $0xc] sm:$0x3] %vm311_vm4, %v1259_v42 }
0x15bc   :  { %v1264_v43 = vpop.permute.xlu1 %1263 }
0x15bd   :  { %1266 = vst.msk [vmem:[#allocation4 + $0x2] sm:$0x3] %vm317_vm5, %v1264_v43 }
0x1611   :  { %v1417_v13 = vpop.permute.xlu0 %1416 }
0x1612   :  { %1419 = vst.msk [vmem:[#allocation4 + $0xe] sm:$0x3] %vm311_vm4, %v1417_v13 }
0x1615   :  { %v1422_v45 = vpop.permute.xlu1 %1421 }
0x1616   :  { %1424 = vst.msk [vmem:[#allocation4] sm:$0x3] %vm317_vm5, %v1422_v45 }
0x1619   :  { %v1428_v47 = vld [vmem:[#allocation4 + $0x8] sm:$0xff] }
0x161d   :  { %v1427_v46 = vld [vmem:[#allocation4] sm:$0xff] }
0x161e   :  { %v1429_v49 = vpack.c.bf16 %v1428_v47, %v1427_v46 }
0x1620   :  { %2639 = vmatmul.mubr.msk.bf16.vlgmr.msra.gmra.mrb[32].mxu1 %vm1548_vm6, %v1429_v49  ;;  %2640 = vmatmul.mubr.msk.bf16.vlgmr.msra.gmra.mrb[36].mxu0 %vm1548_vm6, %v1429_v49 }
0x1621   :  { %2774 = vmatpush3.bf16.msra.mxu1 %v3030_v11  ;;  %2796 = vmatpush3.bf16.msra.mxu0 %v3031_v48 }
0x1622   :  { %2775 = vmatprep.subr.bf16.mxu1 %v3032_v50  ;;  %2797 = vmatprep.subr.bf16.mxu0 %v3033_v14 }
0x1625   :  { %2776 = vmatpush3.bf16.msra.mxu1 %v3034_v51  ;;  %2798 = vmatpush3.bf16.msra.mxu0 %v3035_v53 }
0x1626   :  { %2777 = vmatprep.subr.bf16.mxu1 %v3036_v54  ;;  %2799 = vmatprep.subr.bf16.mxu0 %v3037_v56  ;;  %v3060_v56 = vld [vmem:[%s4122_s9] ss:$16 sps:$4 sm:$0xff]  }
0x1629   :  { %2778 = vmatpush3.bf16.msra.mxu1 %v3038_v57  ;;  %2800 = vmatpush3.bf16.msra.mxu0 %v3039_v58  ;;  %v3063_v57 = vld [vmem:[%s4122_s9 + $0x8] ss:$16 sps:$4 sm:$0xff]   ;;  %v3068_v58 = vld [vmem:[%s4122_s9 + $0x24] ss:$16 sps:$4 sm:$0xff]  }
0x162a   :  { %2779 = vmatprep.subr.bf16.mxu1 %v3040_v59  ;;  %2801 = vmatprep.subr.bf16.mxu0 %v3041_v60  ;;  %v3071_v59 = vld [vmem:[%s4122_s9 + $0x2c] ss:$16 sps:$4 sm:$0xff]   ;;  %v3066_v60 = vld [vmem:[%s4122_s9 + $0x20] ss:$16 sps:$4 sm:$0xff]  }
0x162d   :  { %2780 = vmatpush3.bf16.msra.mxu1 %v3042_v62  ;;  %2802 = vmatpush3.bf16.msra.mxu0 %v3043_v63  ;;  %v3069_v62 = vld [vmem:[%s4122_s9 + $0x28] ss:$16 sps:$4 sm:$0xff]   ;;  %v3074_v63 = vld [vmem:[%s4122_s9 + $0x44] ss:$16 sps:$4 sm:$0xff]  }
0x162e   :  { %2781 = vmatprep.subr.bf16.mxu1 %v3044_v2  ;;  %2803 = vmatprep.subr.bf16.mxu0 %v3045_v4  ;;  %v3077_v2 = vld [vmem:[%s4122_s9 + $0x4c] ss:$16 sps:$4 sm:$0xff]   ;;  %v2004_v4 = vpop.permute.xlu1 %2003 }
0x1631   :  { %2782 = vmatpush3.bf16.msra.mxu1 %v3046_v8  ;;  %2804 = vmatpush3.bf16.msra.mxu0 %v3047_v10  ;;  %v3072_v8 = vld [vmem:[%s4122_s9 + $0x40] ss:$16 sps:$4 sm:$0xff]   ;;  %v3075_v10 = vld [vmem:[%s4122_s9 + $0x48] ss:$16 sps:$4 sm:$0xff]  }
0x1632   :  { %2783 = vmatprep.subr.bf16.mxu1 %v3048_v1  ;;  %2805 = vmatprep.subr.bf16.mxu0 %v3049_v52  ;;  %v2000_v1 = vpop.permute.xlu0 %1999  ;;  %v3080_v52 = vld [vmem:[%s4122_s9 + $0x64] ss:$16 sps:$4 sm:$0xff]  }
0x1635   :  { %2784 = vmatpush3.bf16.msra.mxu1 %v3050_v15  ;;  %2806 = vmatpush3.bf16.msra.mxu0 %v3051_v18  ;;  %v2006_v15 = vsel %vm161_vm3, %v2000_v1, %v2004_v4  ;;  %v3078_v18 = vld [vmem:[%s4122_s9 + $0x60] ss:$16 sps:$4 sm:$0xff]  }
0x1636   :  { %2785 = vmatprep.subr.bf16.mxu1 %v3052_v12  ;;  %2807 = vmatprep.subr.bf16.mxu0 %v3053_v22  ;;  %v3081_v12 = vld [vmem:[%s4122_s9 + $0x68] ss:$16 sps:$4 sm:$0xff]   ;;  %v2007_v22 = vmul.f32 0.125, %v2006_v15 }
0x1639   :  { %2786 = vmatpush3.bf16.msra.mxu1 %v3054_v41  ;;  %2808 = vmatpush3.bf16.msra.mxu0 %v3055_v23  ;;  %v3084_v41 = vld [vmem:[%s4124_s11 + $0x40] sm:$0xff]  }
0x163a   :  { %2787 = vmatprep.subr.bf16.mxu1 %v3056_v25  ;;  %2809 = vmatprep.subr.bf16.mxu0 %v3057_v5  ;;  %v3085_v23 = vld [vmem:[%s4124_s11 + $0xc0] sm:$0xff]  }
0x163b   :  { %v3086_v25 = vld [vmem:[%s4124_s11] sm:$0xff]  }
0x163c   :  { %v3087_v5 = vld [vmem:[%s4124_s11 + $0x80] sm:$0xff]  }
0x163d   :  { %2788 = vmatpush3.bf16.msra.mxu1 %v3058_v55  ;;  %2810 = vmatpush3.bf16.msra.mxu0 %v3059_v44  ;;  %v2008_v55 = vpack.c.bf16 %v2007_v22, %v2007_v22  ;;  %v3088_v44 = vld [vmem:[%s4124_s11 + $0x48] sm:$0xff]  }
0x163e   :  { %2130 = vmatprep.subr.bf16.mxu1 %v3062_v32  ;;  %2171 = vmatprep.subr.bf16.mxu0 %v3065_v35  ;;  %v3089_v32 = vld [vmem:[%s4124_s11 + $0xc8] sm:$0xff]  }
0x163f   :  { %v3090_v35 = vld [vmem:[%s4124_s11 + $0x8] sm:$0xff]  }
0x16f3   :  { %v1586_v61 = vpop.f32.mrb[32].mxu1  ;;  %v1629_v34 = vpop.f32.mrb[36].mxu0 }
0x16f4   :  { %v1587_v36 = vadd.f32 %v1586_v61, %v1451_v27  ;;  %v1630_v37 = vadd.f32 %v1629_v34, %v1459_v28  ;;  %v1588_v38 = vpop.f32.mrb[33].mxu1  ;;  %v1631_v20 = vpop.f32.mrb[37].mxu0  ;;  %v3096_v61 = vld [vmem:[%s4124_s11 + $0x58] sm:$0xff]  }
0x16f5   :  { %v1589_v29 = vadd.f32 %v1588_v38, %v1455_v33  ;;  %v1632_v0 = vadd.f32 %v1631_v20, %v1463_v24  ;;  %v1590_v9 = vpop.f32.mrb[34].mxu1  ;;  %v1633_v30 = vpop.f32.mrb[38].mxu0  ;;  %v3097_v34 = vld [vmem:[%s4124_s11 + $0xd8] sm:$0xff]   ;;  %v3100_v38 = vld [vmem:[%s4124_s11 + $0x60] sm:$0xff]  }
0x16f6   :  { %v1591_v39 = vadd.f32 %v1590_v9, %v1451_v27  ;;  %v1634_v7 = vadd.f32 %v1633_v30, %v1459_v28  ;;  %v1592_v31 = vpop.f32.mrb[35].mxu1  ;;  %v1635_v40 = vpop.f32.mrb[39].mxu0  ;;  %v1638_v13 = vmax.f32 %v1587_v36, 0.0  ;;  %v1640_v45 = vmax.f32 %v1630_v37, 0.0  ;;  %v3092_v27 = vld [vmem:[%s4124_s11 + $0x50] sm:$0xff]   ;;  %v3098_v36 = vld [vmem:[%s4124_s11 + $0x18] sm:$0xff]  }
0x16f7   :  { %v1593_v42 = vadd.f32 %v1592_v31, %v1455_v33  ;;  %v1636_v43 = vadd.f32 %v1635_v40, %v1463_v24  ;;  %v1639_v47 = vmax.f32 %v1589_v29, 0.0  ;;  %v1641_v48 = vmax.f32 %v1632_v0, 0.0  ;;  %v3093_v28 = vld [vmem:[%s4124_s11 + $0xd0] sm:$0xff]   ;;  %v3099_v37 = vld [vmem:[%s4124_s11 + $0x98] sm:$0xff]   ;;  %v3101_v20 = vld [vmem:[%s4124_s11 + $0xe0] sm:$0xff]  }
0x16f8   :  { %v1642_v11 = vmax.f32 %v1591_v39, 0.0  ;;  %v1644_v46 = vmax.f32 %v1634_v7, 0.0  ;;  %v3094_v33 = vld [vmem:[%s4124_s11 + $0x10] sm:$0xff]   ;;  %v3102_v29 = vld [vmem:[%s4124_s11 + $0x20] sm:$0xff]   ;;  %v3104_v9 = vld [vmem:[%s4124_s11 + $0x68] sm:$0xff]  }
0x16f9   :  { %v1643_v49 = vmax.f32 %v1593_v42, 0.0  ;;  %v1645_v50 = vmax.f32 %v1636_v43, 0.0  ;;  %v3095_v24 = vld [vmem:[%s4124_s11 + $0x90] sm:$0xff]   ;;  %v3103_v0 = vld [vmem:[%s4124_s11 + $0xa0] sm:$0xff]   ;;  %v3105_v30 = vld [vmem:[%s4124_s11 + $0xe8] sm:$0xff]  }
0x16fa   :  { %v1646_v14 = vpack.c.bf16 %v1642_v11, %v1638_v13  ;;  %v1648_v51 = vpack.c.bf16 %v1644_v46, %v1640_v45  ;;  %v3106_v39 = vld [vmem:[%s4124_s11 + $0x28] sm:$0xff]   ;;  %v3108_v31 = vld [vmem:[%s4124_s11 + $0x70] sm:$0xff]   ;;  %v3112_v13 = vld [vmem:[%s4124_s11 + $0x78] sm:$0xff]  }
0x16fb   :  { %v1647_v53 = vpack.c.bf16 %v1643_v49, %v1639_v47  ;;  %v1649_v54 = vpack.c.bf16 %v1645_v50, %v1641_v48  ;;  %v3107_v7 = vld [vmem:[%s4124_s11 + $0xa8] sm:$0xff]   ;;  %v3109_v40 = vld [vmem:[%s4124_s11 + $0xf0] sm:$0xff]   ;;  %v3113_v45 = vld [vmem:[%s4124_s11 + $0xf8] sm:$0xff]  }
0x16fc   :  { %v3110_v42 = vld [vmem:[%s4124_s11 + $0x30] sm:$0xff]   ;;  %v3114_v11 = vld [vmem:[%s4124_s11 + $0x38] sm:$0xff]   ;;  %v2641_v49 = vld [vmem:[%s4121_s8] ss:$0 sm:$0xff] }
0x16fd   :  { %1945 = vmatprep.mubr.bf16.mxu1 %v1647_v53  ;;  %1986 = vmatprep.mubr.bf16.mxu0 %v1649_v54  ;;  %v3111_v43 = vld [vmem:[%s4124_s11 + $0xb0] sm:$0xff]   ;;  %v3115_v46 = vld [vmem:[%s4124_s11 + $0xb8] sm:$0xff]  }
0x16fe   :  { %1946 = vmatmul.mubr.bf16.vlgmr.msra.gmra.mrb[36].mxu1 %v1646_v14  ;;  %1987 = vmatmul.mubr.bf16.vlgmr.msra.gmra.mrb[40].mxu0 %v1648_v51 }
0x16ff   :  { %2131 = vmatpush1.bf16.msra.mxu1 %v3060_v56  ;;  %2172 = vmatpush1.bf16.msra.mxu0 %v3063_v57 }
0x1700   :  { %2132 = vmatprep.subr.bf16.mxu1 %v3068_v58  ;;  %2173 = vmatprep.subr.bf16.mxu0 %v3071_v59 }
0x1701   :  { %2162 = vmatprep.mubr.bf16.mxu1 %v3272_v3  ;;  %2203 = vmatprep.mubr.bf16.mxu0 %v3272_v3  ;;  %v3083_v3 = vld [vmem:[%s4122_s9 + $0x6c] ss:$16 sps:$4 sm:$0xff]  }
0x1703   :  { %2133 = vmatpush1.bf16.msra.mxu1 %v3066_v60  ;;  %2174 = vmatpush1.bf16.msra.mxu0 %v3069_v62 }
0x1704   :  { %2134 = vmatprep.subr.bf16.mxu1 %v3074_v63  ;;  %2175 = vmatprep.subr.bf16.mxu0 %v3077_v2 }
0x1707   :  { %2135 = vmatpush1.bf16.msra.mxu1 %v3072_v8  ;;  %2176 = vmatpush1.bf16.msra.mxu0 %v3075_v10  ;;  %v2025_v8 = vld [vmem:[%s4123_s10] sm:$0xf] }
0x1708   :  { %2136 = vmatprep.subr.bf16.mxu1 %v3080_v52  ;;  %2177 = vmatprep.subr.bf16.mxu0 %v3083_v3  ;;  %v2030_v10 = vrot.slane %v2025_v8, %v3420_v17  ;;  %v2038_v1 = vrot.slane %v2025_v8, %v1458_v21  ;;  %v2034_v52 = vrot.slane %v2025_v8, %v3426_v19 }
0x1709   :  { %v2042_v3 = vrot.slane %v2025_v8, %v1462_v26 }
0x170b   :  { %2137 = vmatpush1.bf16.msra.mxu1 %v3078_v18  ;;  %2178 = vmatpush1.bf16.msra.mxu0 %v3081_v12 }
0x170c   :  { %2817 = vmatprep.subr.bf16.mxu1 %v3084_v41  ;;  %2839 = vmatprep.subr.bf16.mxu0 %v3085_v23 }
0x170e   :  { %2690 = vmatmul.mubr.msk.bf16.vlgmr.msra.gmra.mrb[40].mxu1 %vm1548_vm6, %v2008_v55  ;;  %2691 = vmatmul.mubr.msk.bf16.vlgmr.msra.gmra.mrb[44].mxu0 %vm1548_vm6, %v2008_v55 }
0x170f   :  { %2818 = vmatpush3.bf16.msra.mxu1 %v3086_v25  ;;  %2840 = vmatpush3.bf16.msra.mxu0 %v3087_v5 }
0x1710   :  { %2819 = vmatprep.subr.bf16.mxu1 %v3088_v44  ;;  %2841 = vmatprep.subr.bf16.mxu0 %v3089_v32 }
0x1713   :  { %2820 = vmatpush3.bf16.msra.mxu1 %v3090_v35  ;;  %2842 = vmatpush3.bf16.msra.mxu0 %v3091_v6 }
0x1714   :  { %2821 = vmatprep.subr.bf16.mxu1 %v3092_v27  ;;  %2843 = vmatprep.subr.bf16.mxu0 %v3093_v28 }
0x1717   :  { %2822 = vmatpush3.bf16.msra.mxu1 %v3094_v33  ;;  %2844 = vmatpush3.bf16.msra.mxu0 %v3095_v24 }
0x1718   :  { %2823 = vmatprep.subr.bf16.mxu1 %v3096_v61  ;;  %2845 = vmatprep.subr.bf16.mxu0 %v3097_v34  ;;  %v2692_v61 = vld [vmem:[%s4125_s12] ss:$0 sm:$0xff] }
0x171b   :  { %2824 = vmatpush3.bf16.msra.mxu1 %v3098_v36  ;;  %2846 = vmatpush3.bf16.msra.mxu0 %v3099_v37 }
0x171c   :  { %2825 = vmatprep.subr.bf16.mxu1 %v3100_v38  ;;  %2847 = vmatprep.subr.bf16.mxu0 %v3101_v20 }
0x171f   :  { %2826 = vmatpush3.bf16.msra.mxu1 %v3102_v29  ;;  %2848 = vmatpush3.bf16.msra.mxu0 %v3103_v0 }
0x1720   :  { %2827 = vmatprep.subr.bf16.mxu1 %v3104_v9  ;;  %2849 = vmatprep.subr.bf16.mxu0 %v3105_v30 }
0x1723   :  { %2828 = vmatpush3.bf16.msra.mxu1 %v3106_v39  ;;  %2850 = vmatpush3.bf16.msra.mxu0 %v3107_v7 }
0x1724   :  { %2829 = vmatprep.subr.bf16.mxu1 %v3108_v31  ;;  %2851 = vmatprep.subr.bf16.mxu0 %v3109_v40 }
0x1727   :  { %2830 = vmatpush3.bf16.msra.mxu1 %v3110_v42  ;;  %2852 = vmatpush3.bf16.msra.mxu0 %v3111_v43 }
0x1728   :  { %2831 = vmatprep.subr.bf16.mxu1 %v3112_v13  ;;  %2853 = vmatprep.subr.bf16.mxu0 %v3113_v45 }
0x172b   :  { %2832 = vmatpush3.bf16.msra.mxu1 %v3114_v11  ;;  %2854 = vmatpush3.bf16.msra.mxu0 %v3115_v46 }
0x17d1   :  { %v2789_v47 = vpop.f32.mrb[36].mxu1  ;;  %v2811_v48 = vpop.f32.mrb[40].mxu0 }
0x17d2   :  { %v2790_v50 = vpop.f32.mrb[37].mxu1  ;;  %v2812_v14 = vpop.f32.mrb[41].mxu0 }
0x17d3   :  { %v2791_v51 = vadd.f32 %v2790_v50, %v2789_v47  ;;  %v2813_v53 = vadd.f32 %v2812_v14, %v2811_v48  ;;  %v2792_v54 = vpop.f32.mrb[38].mxu1  ;;  %v2814_v56 = vpop.f32.mrb[42].mxu0 }
0x17d4   :  { %v2793_v57 = vpop.f32.mrb[39].mxu1  ;;  %v2815_v58 = vpop.f32.mrb[43].mxu0 }
0x17d5   :  { %v1948_v59 = vadd.f32 %v2791_v51, %v2641_v49  ;;  %v2794_v60 = vadd.f32 %v2793_v57, %v2792_v54  ;;  %v2816_v62 = vadd.f32 %v2815_v58, %v2814_v56 }
0x17d7   :  { %v1989_v63 = vadd.f32 %v2813_v53, %v1948_v59  ;;  %v1951_v2 = vadd.f32 %v2794_v60, %v2641_v49 }
0x17d9   :  { %1996 = vst.msk [vmem:[%s4126_s13] sm:$0xff] %vm1995_vm7, %v1989_v63  ;;  %v1992_v4 = vadd.f32 %v2816_v62, %v1951_v2 }
0x17db   :  { %1997 = vst.msk [vmem:[%s4126_s13 + $0x8] sm:$0xff] %vm1995_vm7, %v1992_v4 }
0x17e1   :  { %v2164_v15 = vpop.f32.mrb[40].mxu1  ;;  %v2205_v18 = vpop.f32.mrb[44].mxu0 }
0x17e2   :  { %v2165_v12 = vadd.f32 %v2164_v15, %v2030_v10  ;;  %v2206_v22 = vadd.f32 %v2205_v18, %v2038_v1  ;;  %v2166_v41 = vpop.f32.mrb[41].mxu1  ;;  %v2207_v23 = vpop.f32.mrb[45].mxu0 }
0x17e3   :  { %v2167_v25 = vadd.f32 %v2166_v41, %v2034_v52  ;;  %v2208_v5 = vadd.f32 %v2207_v23, %v2042_v3  ;;  %v2168_v55 = vpop.f32.mrb[42].mxu1  ;;  %v2209_v44 = vpop.f32.mrb[46].mxu0 }
0x17e4   :  { %v2212_v32 = vmax.f32 %v2165_v12, 0.0  ;;  %v2214_v17 = vmax.f32 %v2206_v22, 0.0  ;;  %v2169_v35 = vpop.f32.mrb[43].mxu1  ;;  %v2210_v6 = vpop.f32.mrb[47].mxu0 }
0x17e5   :  { %v2213_v21 = vmax.f32 %v2167_v25, 0.0  ;;  %v2215_v27 = vmax.f32 %v2208_v5, 0.0 }
0x17e6   :  { %v2216_v16 = vpack.c.bf16 %v2212_v32, %v2212_v32  ;;  %v2218_v26 = vpack.c.bf16 %v2214_v17, %v2214_v17 }
0x17e7   :  { %v2217_v19 = vpack.c.bf16 %v2213_v21, %v2213_v21  ;;  %v2219_v28 = vpack.c.bf16 %v2215_v27, %v2215_v27 }
0x17e9   :  { %2515 = vmatprep.mubr.bf16.mxu1 %v2217_v19  ;;  %2555 = vmatprep.mubr.bf16.mxu0 %v2219_v28 }
0x17ea   :  { %2516 = vmatmul.mubr.bf16.vlgmr.msra.gmra.mrb[44].mxu1 %v2216_v16  ;;  %2556 = vmatmul.mubr.bf16.vlgmr.msra.gmra.mrb[48].mxu0 %v2218_v26 }
0x18bd   :  { %v2833_v33 = vpop.f32.mrb[44].mxu1  ;;  %v2855_v24 = vpop.f32.mrb[48].mxu0 }
0x18be   :  { %v2834_v34 = vpop.f32.mrb[45].mxu1  ;;  %v2856_v36 = vpop.f32.mrb[49].mxu0 }
0x18bf   :  { %v2835_v37 = vadd.f32 %v2834_v34, %v2833_v33  ;;  %v2857_v38 = vadd.f32 %v2856_v36, %v2855_v24  ;;  %v2836_v20 = vpop.f32.mrb[46].mxu1  ;;  %v2858_v29 = vpop.f32.mrb[50].mxu0 }
0x18c0   :  { %v2837_v0 = vpop.f32.mrb[47].mxu1  ;;  %v2859_v9 = vpop.f32.mrb[51].mxu0 }
0x18c1   :  { %v2518_v30 = vadd.f32 %v2835_v37, %v2692_v61 }
0x18c3   :  { %v2558_v39 = vadd.f32 %v2857_v38, %v2518_v30 }
0x18c5   :  { %2564 = vst.msk [vmem:[#allocation5] sm:$0x3] %vm2563_vm8, %v2558_v39 }
0x18c6   :  { %3259 = shalt.err (!%p3256_p4)
}
0x18c7   :  { %s3260_s2 = scalar_lea.hbm %s4127_s14, 32 }
0x18c8   :  { %p3261_p5 = scmp.ne.s32.totalorder %s4127_s14, %s3260_s2  ;;  %p3264_p6 = scmp.lt.u32.totalorder %s3260_s2, %s4127_s14 }
0x18ca   :  { %p3266_p7 = pnand %p3264_p6, %p3261_p5 }
0x18cc   :  { %3269 = shalt.err (!%p3266_p7)
}
0x18cd   :  { %2576 = dma.vmem_to_hbm [thread:$0]  %s2574_s6, 32, %s4127_s14, [#allocation6]  }
0x18ce   :  { %3270 = dma.done.wait [#allocation6], 32  }
0x18cf   :  { %3271 = vsyncadd [#allocation6], 4294967264 }
0x18d0   :  { %2582 = vsyncpa [#allocation6], 1 }

</bundles_post_ra>
